<compile_context>
chip_gen: v6e
topology: v6e:2x2x1
jax: 0.10.0
libtpu: 0.0.40
codegen_flags: <defaults>
</compile_context>

<pallas_src>
import jax
import jax.numpy as jnp
from jax.experimental import pallas as pl
from jax.experimental.pallas import tpu as pltpu

INPUT_MEAN = jnp.array([0.2788, 0.2657, 0.2629], dtype=jnp.float32)
INPUT_STD = jnp.array([0.2064, 0.1944, 0.2252], dtype=jnp.float32)

# 3-tap (k=3, s=2, p=1) conv on a 2x2-grouped grid: ky -> (window row offset, source parity)
_TAP = ((0, 1), (1, 0), (1, 1))


# ----------------------------- Pallas kernels ------------------------------

def _conv_s2g_kernel(halo_ref, x_ref, w_ref, b_ref, o_ref, xpad_ref):
    """3x3 / stride-2 / pad-1 conv (+bias+ReLU) expressed on a grouped grid.

    halo_ref : (1, 1, Wq, K)   grouped row (tile_start - 1)  (zeros for tile 0)
    x_ref    : (1, T, Wq, K)   grouped rows [tile_start, tile_start + T)
    w_ref    : (4, K, C)       weights combined per (row, col) window offset
    b_ref    : (1, C)
    o_ref    : (1, T, Wq, C)
    xpad_ref : (T+1, Wq+1, K)  VMEM scratch; front-padded window source
    """
    T, Wq, C = o_ref.shape[1], o_ref.shape[2], o_ref.shape[3]
    K = x_ref.shape[3]

    # Assemble the zero-bordered window source once per tile.
    xpad_ref[:, 0:1, :] = jnp.zeros((T + 1, 1, K), jnp.float32)   # left zero column
    xpad_ref[0:1, 1:, :] = halo_ref[0]                            # top halo row
    xpad_ref[1:, 1:, :] = x_ref[0]                                # main rows

    # Materialize the two column-parity views once; reuse for both row offsets.
    cols = (xpad_ref[:, 0:Wq, :], xpad_ref[:, 1:Wq + 1, :])       # each (T+1, Wq, K)

    acc = jnp.zeros((T * Wq, C), jnp.float32)
    for ra in (0, 1):
        for rb in (0, 1):
            win = cols[rb][ra:ra + T]                             # (T, Wq, K)
            acc = acc + jnp.dot(win.reshape(T * Wq, K), w_ref[ra * 2 + rb],
                                preferred_element_type=jnp.float32)
    y = jnp.maximum(acc + b_ref[...], 0.0)
    o_ref[0] = y.reshape(T, Wq, C)


def _up_fused_kernel(z2_ref, z1_ref, wu1_ref, bu1_ref, wbig_ref, bbig_ref, o_ref):
    """up_conv1 + skip-add + ReLU + (up_conv2 o heads): pure per-pixel matmuls.

    Two quarter-res pixels are packed per row (lane-dense 128-wide output).
    """
    z3 = jnp.dot(z2_ref[...], wu1_ref[...], preferred_element_type=jnp.float32)
    z4 = jnp.maximum(z3 + bu1_ref[...] + z1_ref[...], 0.0)
    out = jnp.dot(z4, wbig_ref[...], preferred_element_type=jnp.float32) + bbig_ref[...]
    o_ref[...] = out.astype(o_ref.dtype)


# ----------------------------- tiling helpers -------------------------------

def _pick_row_tile(hq, wq, max_rows=2048):
    """Largest divisor of hq with tile*wq <= max_rows (and <= hq/2 when possible)."""
    cap = max(1, min(max_rows // max(wq, 1), max(hq // 2, 1)))
    t = 1
    for d in range(1, hq + 1):
        if hq % d == 0 and d <= cap:
            t = d
    return t


def _pick_tile(n, max_t=2048):
    """Largest multiple-of-8 divisor of n that is <= max_t (or n itself)."""
    if n <= max_t:
        return n
    for t in range(max_t, 7, -1):
        if n % t == 0 and t % 8 == 0:
            return t
    return n


def _make_halo(xg, t):
    """halo[b, j] = grouped row j*t - 1 (zeros for j == 0)."""
    B, Hq, Wq, K = xg.shape
    n = Hq // t
    zero = jnp.zeros((B, 1, Wq, K), xg.dtype)
    if n == 1:
        return zero
    return jnp.concatenate([zero, xg[:, t - 1::t, :, :][:, : n - 1]], axis=1)


# ----------------------------- kernel wrappers -------------------------------

def conv_s2_grouped(x, halo, w4, bias, t):
    """Row-tiled grouped stride-2 conv.  x: (B, Hq, Wq, K) -> (B, Hq, Wq, C)."""
    B, Hq, Wq, K = x.shape
    C = w4.shape[-1]
    n_tiles = Hq // t
    return pl.pallas_call(
        _conv_s2g_kernel,
        out_shape=jax.ShapeDtypeStruct((B, Hq, Wq, C), jnp.float32),
        grid=(B, n_tiles),
        in_specs=[
            pl.BlockSpec((1, 1, Wq, K), lambda b, j: (b, j, 0, 0)),   # halo row
            pl.BlockSpec((1, t, Wq, K), lambda b, j: (b, j, 0, 0)),   # main rows
            pl.BlockSpec((4, K, C), lambda b, j: (0, 0, 0)),
            pl.BlockSpec((1, C), lambda b, j: (0, 0)),
        ],
        out_specs=pl.BlockSpec((1, t, Wq, C), lambda b, j: (b, j, 0, 0)),
        scratch_shapes=[pltpu.VMEM((t + 1, Wq + 1, K), jnp.float32)],
        compiler_params=pltpu.CompilerParams(
            dimension_semantics=("parallel", "parallel")),
    )(halo, x, w4, bias.reshape(1, C))


def up_fused(z2p, z1p, wu1m2, bu1t2, wbig2, bbig2, tm_max=2048):
    M = z2p.shape[0]
    tm = _pick_tile(M, tm_max)
    return pl.pallas_call(
        _up_fused_kernel,
        out_shape=jax.ShapeDtypeStruct((M, 128), jnp.float32),
        grid=(M // tm,),
        in_specs=[
            pl.BlockSpec((tm, 64), lambda i: (i, 0)),
            pl.BlockSpec((tm, 128), lambda i: (i, 0)),
            pl.BlockSpec((64, 128), lambda i: (0, 0)),
            pl.BlockSpec((1, 128), lambda i: (0, 0)),
            pl.BlockSpec((128, 128), lambda i: (0, 0)),
            pl.BlockSpec((1, 128), lambda i: (0, 0)),
        ],
        out_specs=pl.BlockSpec((tm, 128), lambda i: (i, 0)),
        compiler_params=pltpu.CompilerParams(dimension_semantics=("parallel",)),
    )(z2p, z1p, wu1m2, bu1t2.reshape(1, 128), wbig2, bbig2.reshape(1, 128))


# ------------------------------ weight packing --------------------------------

def _pack_s2_conv(w):
    """(Cout, Cin, 3, 3) torch conv -> (4, 4*Cin, Cout); input grouped 2x2 (dy,dx,c)."""
    Cout, Cin = w.shape[0], w.shape[1]
    w4 = jnp.zeros((4, 4 * Cin, Cout), jnp.float32)
    for ky in range(3):
        ra, dy = _TAP[ky]
        for kx in range(3):
            rb, dx = _TAP[kx]
            g = dy * 2 + dx
            w4 = w4.at[ra * 2 + rb, g * Cin:(g + 1) * Cin, :].set(w[:, :, ky, kx].T)
    return w4


def _pack_conv1_grouped(w):
    """(16, 3, 3, 3) conv1 -> (4, 48, 64).

    Input grouped 4x4 at quarter res, slots (fy, fx, cin); output grouped 2x2,
    slots (dy, dx, cout).
    """
    Cout, Cin = w.shape[0], w.shape[1]
    w4 = jnp.zeros((4, 16 * Cin, 4 * Cout), jnp.float32)
    for dy in range(2):
        for ky in range(3):
            t = 2 * dy - 1 + ky
            ra, fy = ((1, t) if t >= 0 else (0, 3))
            for dx in range(2):
                for kx in range(3):
                    s = 2 * dx - 1 + kx
                    rb, fx = ((1, s) if s >= 0 else (0, 3))
                    i0 = (fy * 4 + fx) * Cin
                    o0 = (dy * 2 + dx) * Cout
                    w4 = w4.at[ra * 2 + rb, i0:i0 + Cin, o0:o0 + Cout].set(
                        w[:, :, ky, kx].T)
    return w4


# ------------------------------ parameters ----------------------------------

def init_raw_params(key):
    def conv_init(k, cout, cin, kh, kw):
        k1, k2 = jax.random.split(k)
        bound = (cin * kh * kw) ** -0.5
        w = jax.random.uniform(k1, (cout, cin, kh, kw), jnp.float32, -bound, bound)
        b = jax.random.uniform(k2, (cout,), jnp.float32, -bound, bound)
        return w, b

    def convT_init(k, cin, cout, kh, kw):
        k1, k2 = jax.random.split(k)
        bound = (cout * kh * kw) ** -0.5
        w = jax.random.uniform(k1, (cin, cout, kh, kw), jnp.float32, -bound, bound)
        b = jax.random.uniform(k2, (cout,), jnp.float32, -bound, bound)
        return w, b

    ks = jax.random.split(key, 6)
    w1, b1 = conv_init(ks[0], 16, 3, 3, 3)       # down_conv1
    w2, b2 = conv_init(ks[1], 32, 16, 3, 3)      # down_conv2
    wu1, bu1 = convT_init(ks[2], 32, 16, 2, 2)   # up_conv1
    wu2, bu2 = convT_init(ks[3], 16, 16, 2, 2)   # up_conv2
    wl, bl = conv_init(ks[4], 3, 16, 1, 1)       # logits_conv
    wd, bd = conv_init(ks[5], 1, 16, 1, 1)       # depth_conv
    return {"w1": w1, "b1": b1, "w2": w2, "b2": b2, "wu1": wu1, "bu1": bu1,
            "wu2": wu2, "bu2": bu2, "wl": wl, "bl": bl, "wd": wd, "bd": bd}


def pack_params(raw):
    # Fold the two 1x1 heads through up_conv2 (all linear, no nonlinearity between).
    wh = jnp.concatenate([raw["wl"][:, :, 0, 0].T, raw["wd"][:, :, 0, 0].T], axis=1)  # (16, 4)
    bh = jnp.concatenate([raw["bl"], raw["bd"]])                                      # (4,)
    wcomb = jnp.einsum("codx,oh->cdxh", raw["wu2"], wh).reshape(16, 16)
    bcomb = jnp.tile(raw["bu2"] @ wh + bh, 4)                                         # (16,)

    # up_conv1 as per-pixel matmul 32 -> 64, cols=(dy,dx,co)
    wu1m = jnp.transpose(raw["wu1"], (0, 2, 3, 1)).reshape(32, 64)
    bu1t = jnp.tile(raw["bu1"], 4)
    # (up_conv2 o heads) per (dy,dx) group: block-diagonal 64 -> 64
    wbig = jnp.kron(jnp.eye(4, dtype=jnp.float32), wcomb)
    bbig = jnp.tile(bcomb, 4)

    eye2 = jnp.eye(2, dtype=jnp.float32)
    return {
        "w4_1": _pack_conv1_grouped(raw["w1"]), "b1": jnp.tile(raw["b1"], 4),
        "w4_2": _pack_s2_conv(raw["w2"]), "b2": raw["b2"],
        # 2-pixel packed up-path weights (lane-dense 128-wide output)
        "wu1m2": jnp.kron(eye2, wu1m), "bu1t2": jnp.tile(bu1t, 2),
        "wbig2": jnp.kron(eye2, wbig), "bbig2": jnp.tile(bbig, 2),
    }


# ------------------------------ forward pass --------------------------------

def detector_forward(x_nchw, p):
    """x: (B, 3, H, W) in [0, 1]. Returns (logits (B,3,H,W), raw_depth (B,H,W))."""
    B, C, H, W = x_nchw.shape
    assert H % 4 == 0 and W % 8 == 0, "H must be a multiple of 4, W of 8"
    Hq, Wq = H // 4, W // 4
    Wqh = Wq // 2

    # Normalization fused into the (required anyway) 4x4 space-to-depth copy.
    x = jnp.transpose(x_nchw, (0, 2, 3, 1))
    xn = (x - INPUT_MEAN) * (1.0 / INPUT_STD)
    xg = xn.reshape(B, Hq, 4, Wq, 4, 3)
    xg = jnp.transpose(xg, (0, 1, 3, 2, 4, 5)).reshape(B, Hq, Wq, 48)

    t = _pick_row_tile(Hq, Wq)

    # z1 = relu(down_conv1(z)), stored directly in 2x2-grouped layout (64 ch).
    z1g = conv_s2_grouped(xg, _make_halo(xg, t), p["w4_1"], p["b1"], t)   # (B,Hq,Wq,64)

    # z2 = relu(down_conv2(z1))
    z2 = conv_s2_grouped(z1g, _make_halo(z1g, t), p["w4_2"], p["b2"], t)  # (B,Hq,Wq,32)

    # up_conv1 + skip-add + ReLU + (up_conv2 o heads), 2 pixels packed per row.
    Mp = B * Hq * Wqh
    out_p = up_fused(z2.reshape(Mp, 64), z1g.reshape(Mp, 128),
                     p["wu1m2"], p["bu1t2"], p["wbig2"], p["bbig2"])      # (Mp, 128)

    # Merged tail: one fused slice+transpose per head (no intermediate BHWC pass).
    out9 = out_p.reshape(B, Hq, Wqh, 2, 2, 2, 2, 2, 4)   # (b,r,qc,pix,dy,dx,dy2,dx2,h)
    logits = jnp.transpose(out9[..., :3],
                           (0, 8, 1, 4, 6, 2, 3, 5, 7)).reshape(B, 3, H, W)
    raw_depth = jnp.transpose(out9[..., 3],
                              (0, 1, 4, 6, 2, 3, 5, 7)).reshape(B, H, W)
    return logits, raw_depth


# ------------------------- pure-JAX reference (check) -------------------------

def _conv2d_ref(x, w, b, stride, pad):
    y = jax.lax.conv_general_dilated(
        x, w, window_strides=(stride, stride), padding=((pad, pad), (pad, pad)),
        dimension_numbers=("NCHW", "OIHW", "NCHW"),
        precision=jax.lax.Precision.HIGHEST)
    return y + b[None, :, None, None]


def _convT2x2_ref(x, w, b):
    y = jnp.einsum("bihw,iodx->bohdwx", x, w, precision=jax.lax.Precision.HIGHEST)
    Bb, Co, h, _, ww, _ = y.shape
    return y.reshape(Bb, Co, 2 * h, 2 * ww) + b[None, :, None, None]


def detector_forward_ref(x, raw):
    z = (x - INPUT_MEAN.reshape(1, 3, 1, 1)) / INPUT_STD.reshape(1, 3, 1, 1)
    z1 = jax.nn.relu(_conv2d_ref(z, raw["w1"], raw["b1"], 2, 1))
    z2 = jax.nn.relu(_conv2d_ref(z1, raw["w2"], raw["b2"], 2, 1))
    z3 = _convT2x2_ref(z2, raw["wu1"], raw["bu1"])
    z4 = jax.nn.relu(z3 + z1)
    z5 = _convT2x2_ref(z4, raw["wu2"], raw["bu2"])
    logits = jnp.einsum("bchw,oc->bohw", z5, raw["wl"][:, :, 0, 0],
                        precision=jax.lax.Precision.HIGHEST) + raw["bl"][None, :, None, None]
    depth = jnp.einsum("bchw,oc->bohw", z5, raw["wd"][:, :, 0, 0],
                       precision=jax.lax.Precision.HIGHEST) + raw["bd"][None, :, None, None]
    return logits, depth[:, 0]


if __name__ == "__main__":
    key = jax.random.PRNGKey(0)
    kx, kp = jax.random.split(key)
    # NCHW input in [0, 1]; H multiple of 4, W multiple of 8.
    x = jax.random.uniform(kx, (2, 3, 32, 32), jnp.float32)
    raw = init_raw_params(kp)
    params = pack_params(raw)

    fwd = jax.jit(lambda inp: detector_forward(inp, params))
    logits, depth = fwd(x)
    jax.block_until_ready((logits, depth))

    assert logits.shape == (2, 3, 32, 32) and logits.dtype == jnp.float32
    assert depth.shape == (2, 32, 32) and depth.dtype == jnp.float32

    # Cross-check against a plain-JAX reference of the PyTorch module.
    logits_ref, depth_ref = detector_forward_ref(x, raw)
    assert float(jnp.max(jnp.abs(logits - logits_ref))) < 5e-2
    assert float(jnp.max(jnp.abs(depth - depth_ref))) < 5e-2

    print("KERNEL_OK")
</pallas_src>

<mosaic_0001>
module attributes {stable_mosaic.version = 11 : i64} {
  func.func @_conv_s2g_kernel(%arg0: i32, %arg1: i32, %arg2: memref<1x1x8x64xf32, #tpu.memory_space<vmem>>, %arg3: memref<1x4x8x64xf32, #tpu.memory_space<vmem>>, %arg4: memref<4x64x32xf32, #tpu.memory_space<vmem>>, %arg5: memref<1x32xf32, #tpu.memory_space<vmem>>, %arg6: memref<1x4x8x32xf32, #tpu.memory_space<vmem>>, %arg7: memref<5x9x64xf32, #tpu.memory_space<vmem>>) attributes {dimension_semantics = [#tpu.dimension_semantics<parallel>, #tpu.dimension_semantics<parallel>], iteration_bounds = array<i64: 2, 2>, scalar_prefetch = 0 : i64, scratch_operands = 1 : i64, tpu.core_type = #tpu.core_type<tc>, window_params = [{transform_indices = @transform_0, window_bounds = array<i64: 1, 1, 8, 64>}, {transform_indices = @transform_1, window_bounds = array<i64: 1, 4, 8, 64>}, {pipeline_mode = #tpu.pipeline_mode<synchronous>, transform_indices = @transform_2, window_bounds = array<i64: 4, 64, 32>}, {pipeline_mode = #tpu.pipeline_mode<synchronous>, transform_indices = @transform_3, window_bounds = array<i64: 1, 32>}, {transform_indices = @transform_4, window_bounds = array<i64: 1, 4, 8, 32>}]} {
    %cst = arith.constant 0.000000e+00 : f32
    %0 = vector.broadcast %cst : f32 to vector<5x1x64xf32>
    %c0 = arith.constant 0 : index
    %c0_0 = arith.constant 0 : index
    %c0_1 = arith.constant 0 : index
    %1 = vector.load %arg7[%c0, %c0_0, %c0_1] : memref<5x9x64xf32, #tpu.memory_space<vmem>>, vector<5x1x64xf32>
    tpu.vector_store %arg7[%c0, %c0_0, %c0_1], %0 {strides = array<i32>} : memref<5x9x64xf32, #tpu.memory_space<vmem>>, vector<5x1x64xf32>,
    %c0_2 = arith.constant 0 : index
    %c0_3 = arith.constant 0 : index
    %c0_4 = arith.constant 0 : index
    %c0_5 = arith.constant 0 : index
    %2 = vector.load %arg2[%c0_2, %c0_3, %c0_4, %c0_5] : memref<1x1x8x64xf32, #tpu.memory_space<vmem>>, vector<1x1x8x64xf32>
    %3 = vector.shape_cast %2 : vector<1x1x8x64xf32> to vector<1x8x64xf32>
    %c0_6 = arith.constant 0 : index
    %c1 = arith.constant 1 : index
    %c0_7 = arith.constant 0 : index
    %4 = vector.load %arg7[%c0_6, %c1, %c0_7] : memref<5x9x64xf32, #tpu.memory_space<vmem>>, vector<1x8x64xf32>
    tpu.vector_store %arg7[%c0_6, %c1, %c0_7], %3 {strides = array<i32>} : memref<5x9x64xf32, #tpu.memory_space<vmem>>, vector<1x8x64xf32>,
    %c0_8 = arith.constant 0 : index
    %c0_9 = arith.constant 0 : index
    %c0_10 = arith.constant 0 : index
    %c0_11 = arith.constant 0 : index
    %5 = vector.load %arg3[%c0_8, %c0_9, %c0_10, %c0_11] : memref<1x4x8x64xf32, #tpu.memory_space<vmem>>, vector<1x4x8x64xf32>
    %6 = vector.shape_cast %5 : vector<1x4x8x64xf32> to vector<4x8x64xf32>
    %c1_12 = arith.constant 1 : index
    %c1_13 = arith.constant 1 : index
    %c0_14 = arith.constant 0 : index
    %7 = vector.load %arg7[%c1_12, %c1_13, %c0_14] : memref<5x9x64xf32, #tpu.memory_space<vmem>>, vector<4x8x64xf32>
    tpu.vector_store %arg7[%c1_12, %c1_13, %c0_14], %6 {strides = array<i32>} : memref<5x9x64xf32, #tpu.memory_space<vmem>>, vector<4x8x64xf32>,
    %c0_15 = arith.constant 0 : index
    %c0_16 = arith.constant 0 : index
    %c0_17 = arith.constant 0 : index
    %8 = vector.load %arg7[%c0_15, %c0_16, %c0_17] : memref<5x9x64xf32, #tpu.memory_space<vmem>>, vector<5x8x64xf32>
    %c0_18 = arith.constant 0 : index
    %c1_19 = arith.constant 1 : index
    %c0_20 = arith.constant 0 : index
    %9 = vector.load %arg7[%c0_18, %c1_19, %c0_20] : memref<5x9x64xf32, #tpu.memory_space<vmem>>, vector<5x8x64xf32>
    %cst_21 = arith.constant 0.000000e+00 : f32
    %10 = vector.broadcast %cst_21 : f32 to vector<32x32xf32>
    %11 = vector.extract_strided_slice %8 {offsets = [0, 0, 0], sizes = [4, 8, 64], strides = [1, 1, 1]} : vector<5x8x64xf32> to vector<4x8x64xf32>
    %12 = vector.shape_cast %11 : vector<4x8x64xf32> to vector<32x64xf32>
    %c0_22 = arith.constant 0 : index
    %c0_23 = arith.constant 0 : index
    %c0_24 = arith.constant 0 : index
    %13 = vector.load %arg4[%c0_22, %c0_23, %c0_24] : memref<4x64x32xf32, #tpu.memory_space<vmem>>, vector<1x64x32xf32>
    %14 = vector.shape_cast %13 : vector<1x64x32xf32> to vector<64x32xf32>
    %cst_25 = arith.constant dense<0.000000e+00> : vector<32x32xf32>
    %15 = tpu.matmul %12, %14, %cst_25 {dimension_numbers = #tpu.dot_dimension_numbers<[1], [0], [0], [1], [0, 0, 1, 1], [], []>} : vector<32x64xf32>, vector<64x32xf32>, vector<32x32xf32> -> vector<32x32xf32>
    %16 = arith.addf %10, %15 : vector<32x32xf32>
    %17 = vector.extract_strided_slice %9 {offsets = [0, 0, 0], sizes = [4, 8, 64], strides = [1, 1, 1]} : vector<5x8x64xf32> to vector<4x8x64xf32>
    %18 = vector.shape_cast %17 : vector<4x8x64xf32> to vector<32x64xf32>
    %c1_26 = arith.constant 1 : index
    %c0_27 = arith.constant 0 : index
    %c0_28 = arith.constant 0 : index
    %19 = vector.load %arg4[%c1_26, %c0_27, %c0_28] : memref<4x64x32xf32, #tpu.memory_space<vmem>>, vector<1x64x32xf32>
    %20 = vector.shape_cast %19 : vector<1x64x32xf32> to vector<64x32xf32>
    %cst_29 = arith.constant dense<0.000000e+00> : vector<32x32xf32>
    %21 = tpu.matmul %18, %20, %cst_29 {dimension_numbers = #tpu.dot_dimension_numbers<[1], [0], [0], [1], [0, 0, 1, 1], [], []>} : vector<32x64xf32>, vector<64x32xf32>, vector<32x32xf32> -> vector<32x32xf32>
    %22 = arith.addf %16, %21 : vector<32x32xf32>
    %23 = vector.extract_strided_slice %8 {offsets = [1, 0, 0], sizes = [4, 8, 64], strides = [1, 1, 1]} : vector<5x8x64xf32> to vector<4x8x64xf32>
    %24 = vector.shape_cast %23 : vector<4x8x64xf32> to vector<32x64xf32>
    %c2 = arith.constant 2 : index
    %c0_30 = arith.constant 0 : index
    %c0_31 = arith.constant 0 : index
    %25 = vector.load %arg4[%c2, %c0_30, %c0_31] : memref<4x64x32xf32, #tpu.memory_space<vmem>>, vector<1x64x32xf32>
    %26 = vector.shape_cast %25 : vector<1x64x32xf32> to vector<64x32xf32>
    %cst_32 = arith.constant dense<0.000000e+00> : vector<32x32xf32>
    %27 = tpu.matmul %24, %26, %cst_32 {dimension_numbers = #tpu.dot_dimension_numbers<[1], [0], [0], [1], [0, 0, 1, 1], [], []>} : vector<32x64xf32>, vector<64x32xf32>, vector<32x32xf32> -> vector<32x32xf32>
    %28 = arith.addf %22, %27 : vector<32x32xf32>
    %29 = vector.extract_strided_slice %9 {offsets = [1, 0, 0], sizes = [4, 8, 64], strides = [1, 1, 1]} : vector<5x8x64xf32> to vector<4x8x64xf32>
    %30 = vector.shape_cast %29 : vector<4x8x64xf32> to vector<32x64xf32>
    %c3 = arith.constant 3 : index
    %c0_33 = arith.constant 0 : index
    %c0_34 = arith.constant 0 : index
    %31 = vector.load %arg4[%c3, %c0_33, %c0_34] : memref<4x64x32xf32, #tpu.memory_space<vmem>>, vector<1x64x32xf32>
    %32 = vector.shape_cast %31 : vector<1x64x32xf32> to vector<64x32xf32>
    %cst_35 = arith.constant dense<0.000000e+00> : vector<32x32xf32>
    %33 = tpu.matmul %30, %32, %cst_35 {dimension_numbers = #tpu.dot_dimension_numbers<[1], [0], [0], [1], [0, 0, 1, 1], [], []>} : vector<32x64xf32>, vector<64x32xf32>, vector<32x32xf32> -> vector<32x32xf32>
    %34 = arith.addf %28, %33 : vector<32x32xf32>
    %c0_36 = arith.constant 0 : index
    %c0_37 = arith.constant 0 : index
    %35 = vector.load %arg5[%c0_36, %c0_37] : memref<1x32xf32, #tpu.memory_space<vmem>>, vector<1x32xf32>
    %36 = vector.broadcast %35 : vector<1x32xf32> to vector<32x32xf32>
    %37 = arith.addf %34, %36 : vector<32x32xf32>
    %cst_38 = arith.constant 0.000000e+00 : f32
    %38 = vector.broadcast %cst_38 : f32 to vector<32x32xf32>
    %39 = arith.maximumf %37, %38 : vector<32x32xf32>
    %40 = vector.shape_cast %39 : vector<32x32xf32> to vector<4x8x32xf32>
    %c0_39 = arith.constant 0 : index
    %c0_40 = arith.constant 0 : index
    %c0_41 = arith.constant 0 : index
    %c0_42 = arith.constant 0 : index
    %41 = vector.load %arg6[%c0_39, %c0_40, %c0_41, %c0_42] : memref<1x4x8x32xf32, #tpu.memory_space<vmem>>, vector<1x4x8x32xf32>
    %42 = vector.shape_cast %41 : vector<1x4x8x32xf32> to vector<4x8x32xf32>
    %43 = vector.shape_cast %40 : vector<4x8x32xf32> to vector<1x4x8x32xf32>
    tpu.vector_store %arg6[%c0_39, %c0_40, %c0_41, %c0_42], %43 {strides = array<i32>} : memref<1x4x8x32xf32, #tpu.memory_space<vmem>>, vector<1x4x8x32xf32>,
    return
  }
  func.func @transform_0(%arg0: i32, %arg1: i32) -> (i32, i32, i32, i32) {
    %c0_i32 = arith.constant 0 : i32
    %c0_i32_0 = arith.constant 0 : i32
    %c0_i32_1 = arith.constant 0 : i32
    return %arg0, %arg1, %c0_i32, %c0_i32_0 : i32, i32, i32, i32
  }
  func.func @transform_1(%arg0: i32, %arg1: i32) -> (i32, i32, i32, i32) {
    %c0_i32 = arith.constant 0 : i32
    %c0_i32_0 = arith.constant 0 : i32
    %c0_i32_1 = arith.constant 0 : i32
    return %arg0, %arg1, %c0_i32, %c0_i32_0 : i32, i32, i32, i32
  }
  func.func @transform_2(%arg0: i32, %arg1: i32) -> (i32, i32, i32) {
    %c0_i32 = arith.constant 0 : i32
    %c0_i32_0 = arith.constant 0 : i32
    %c0_i32_1 = arith.constant 0 : i32
    %c0_i32_2 = arith.constant 0 : i32
    return %c0_i32, %c0_i32_0, %c0_i32_1 : i32, i32, i32
  }
  func.func @transform_3(%arg0: i32, %arg1: i32) -> (i32, i32) {
    %c0_i32 = arith.constant 0 : i32
    %c0_i32_0 = arith.constant 0 : i32
    %c0_i32_1 = arith.constant 0 : i32
    return %c0_i32, %c0_i32_0 : i32, i32
  }
  func.func @transform_4(%arg0: i32, %arg1: i32) -> (i32, i32, i32, i32) {
    %c0_i32 = arith.constant 0 : i32
    %c0_i32_0 = arith.constant 0 : i32
    %c0_i32_1 = arith.constant 0 : i32
    return %arg0, %arg1, %c0_i32, %c0_i32_0 : i32, i32, i32, i32
  }
}

module attributes {stable_mosaic.version = 11 : i64} {
  func.func @_conv_s2g_kernel(%arg0: i32, %arg1: i32, %arg2: memref<1x1x8x48xf32, #tpu.memory_space<vmem>>, %arg3: memref<1x4x8x48xf32, #tpu.memory_space<vmem>>, %arg4: memref<4x48x64xf32, #tpu.memory_space<vmem>>, %arg5: memref<1x64xf32, #tpu.memory_space<vmem>>, %arg6: memref<1x4x8x64xf32, #tpu.memory_space<vmem>>, %arg7: memref<5x9x48xf32, #tpu.memory_space<vmem>>) attributes {dimension_semantics = [#tpu.dimension_semantics<parallel>, #tpu.dimension_semantics<parallel>], iteration_bounds = array<i64: 2, 2>, scalar_prefetch = 0 : i64, scratch_operands = 1 : i64, tpu.core_type = #tpu.core_type<tc>, window_params = [{transform_indices = @transform_0, window_bounds = array<i64: 1, 1, 8, 48>}, {transform_indices = @transform_1, window_bounds = array<i64: 1, 4, 8, 48>}, {pipeline_mode = #tpu.pipeline_mode<synchronous>, transform_indices = @transform_2, window_bounds = array<i64: 4, 48, 64>}, {pipeline_mode = #tpu.pipeline_mode<synchronous>, transform_indices = @transform_3, window_bounds = array<i64: 1, 64>}, {transform_indices = @transform_4, window_bounds = array<i64: 1, 4, 8, 64>}]} {
    %cst = arith.constant 0.000000e+00 : f32
    %0 = vector.broadcast %cst : f32 to vector<5x1x48xf32>
    %c0 = arith.constant 0 : index
    %c0_0 = arith.constant 0 : index
    %c0_1 = arith.constant 0 : index
    %1 = vector.load %arg7[%c0, %c0_0, %c0_1] : memref<5x9x48xf32, #tpu.memory_space<vmem>>, vector<5x1x48xf32>
    tpu.vector_store %arg7[%c0, %c0_0, %c0_1], %0 {strides = array<i32>} : memref<5x9x48xf32, #tpu.memory_space<vmem>>, vector<5x1x48xf32>,
    %c0_2 = arith.constant 0 : index
    %c0_3 = arith.constant 0 : index
    %c0_4 = arith.constant 0 : index
    %c0_5 = arith.constant 0 : index
    %2 = vector.load %arg2[%c0_2, %c0_3, %c0_4, %c0_5] : memref<1x1x8x48xf32, #tpu.memory_space<vmem>>, vector<1x1x8x48xf32>
    %3 = vector.shape_cast %2 : vector<1x1x8x48xf32> to vector<1x8x48xf32>
    %c0_6 = arith.constant 0 : index
    %c1 = arith.constant 1 : index
    %c0_7 = arith.constant 0 : index
    %4 = vector.load %arg7[%c0_6, %c1, %c0_7] : memref<5x9x48xf32, #tpu.memory_space<vmem>>, vector<1x8x48xf32>
    tpu.vector_store %arg7[%c0_6, %c1, %c0_7], %3 {strides = array<i32>} : memref<5x9x48xf32, #tpu.memory_space<vmem>>, vector<1x8x48xf32>,
    %c0_8 = arith.constant 0 : index
    %c0_9 = arith.constant 0 : index
    %c0_10 = arith.constant 0 : index
    %c0_11 = arith.constant 0 : index
    %5 = vector.load %arg3[%c0_8, %c0_9, %c0_10, %c0_11] : memref<1x4x8x48xf32, #tpu.memory_space<vmem>>, vector<1x4x8x48xf32>
    %6 = vector.shape_cast %5 : vector<1x4x8x48xf32> to vector<4x8x48xf32>
    %c1_12 = arith.constant 1 : index
    %c1_13 = arith.constant 1 : index
    %c0_14 = arith.constant 0 : index
    %7 = vector.load %arg7[%c1_12, %c1_13, %c0_14] : memref<5x9x48xf32, #tpu.memory_space<vmem>>, vector<4x8x48xf32>
    tpu.vector_store %arg7[%c1_12, %c1_13, %c0_14], %6 {strides = array<i32>} : memref<5x9x48xf32, #tpu.memory_space<vmem>>, vector<4x8x48xf32>,
    %c0_15 = arith.constant 0 : index
    %c0_16 = arith.constant 0 : index
    %c0_17 = arith.constant 0 : index
    %8 = vector.load %arg7[%c0_15, %c0_16, %c0_17] : memref<5x9x48xf32, #tpu.memory_space<vmem>>, vector<5x8x48xf32>
    %c0_18 = arith.constant 0 : index
    %c1_19 = arith.constant 1 : index
    %c0_20 = arith.constant 0 : index
    %9 = vector.load %arg7[%c0_18, %c1_19, %c0_20] : memref<5x9x48xf32, #tpu.memory_space<vmem>>, vector<5x8x48xf32>
    %cst_21 = arith.constant 0.000000e+00 : f32
    %10 = vector.broadcast %cst_21 : f32 to vector<32x64xf32>
    %11 = vector.extract_strided_slice %8 {offsets = [0, 0, 0], sizes = [4, 8, 48], strides = [1, 1, 1]} : vector<5x8x48xf32> to vector<4x8x48xf32>
    %12 = vector.shape_cast %11 : vector<4x8x48xf32> to vector<32x48xf32>
    %c0_22 = arith.constant 0 : index
    %c0_23 = arith.constant 0 : index
    %c0_24 = arith.constant 0 : index
    %13 = vector.load %arg4[%c0_22, %c0_23, %c0_24] : memref<4x48x64xf32, #tpu.memory_space<vmem>>, vector<1x48x64xf32>
    %14 = vector.shape_cast %13 : vector<1x48x64xf32> to vector<48x64xf32>
    %cst_25 = arith.constant dense<0.000000e+00> : vector<32x64xf32>
    %15 = tpu.matmul %12, %14, %cst_25 {dimension_numbers = #tpu.dot_dimension_numbers<[1], [0], [0], [1], [0, 0, 1, 1], [], []>} : vector<32x48xf32>, vector<48x64xf32>, vector<32x64xf32> -> vector<32x64xf32>
    %16 = arith.addf %10, %15 : vector<32x64xf32>
    %17 = vector.extract_strided_slice %9 {offsets = [0, 0, 0], sizes = [4, 8, 48], strides = [1, 1, 1]} : vector<5x8x48xf32> to vector<4x8x48xf32>
    %18 = vector.shape_cast %17 : vector<4x8x48xf32> to vector<32x48xf32>
    %c1_26 = arith.constant 1 : index
    %c0_27 = arith.constant 0 : index
    %c0_28 = arith.constant 0 : index
    %19 = vector.load %arg4[%c1_26, %c0_27, %c0_28] : memref<4x48x64xf32, #tpu.memory_space<vmem>>, vector<1x48x64xf32>
    %20 = vector.shape_cast %19 : vector<1x48x64xf32> to vector<48x64xf32>
    %cst_29 = arith.constant dense<0.000000e+00> : vector<32x64xf32>
    %21 = tpu.matmul %18, %20, %cst_29 {dimension_numbers = #tpu.dot_dimension_numbers<[1], [0], [0], [1], [0, 0, 1, 1], [], []>} : vector<32x48xf32>, vector<48x64xf32>, vector<32x64xf32> -> vector<32x64xf32>
    %22 = arith.addf %16, %21 : vector<32x64xf32>
    %23 = vector.extract_strided_slice %8 {offsets = [1, 0, 0], sizes = [4, 8, 48], strides = [1, 1, 1]} : vector<5x8x48xf32> to vector<4x8x48xf32>
    %24 = vector.shape_cast %23 : vector<4x8x48xf32> to vector<32x48xf32>
    %c2 = arith.constant 2 : index
    %c0_30 = arith.constant 0 : index
    %c0_31 = arith.constant 0 : index
    %25 = vector.load %arg4[%c2, %c0_30, %c0_31] : memref<4x48x64xf32, #tpu.memory_space<vmem>>, vector<1x48x64xf32>
    %26 = vector.shape_cast %25 : vector<1x48x64xf32> to vector<48x64xf32>
    %cst_32 = arith.constant dense<0.000000e+00> : vector<32x64xf32>
    %27 = tpu.matmul %24, %26, %cst_32 {dimension_numbers = #tpu.dot_dimension_numbers<[1], [0], [0], [1], [0, 0, 1, 1], [], []>} : vector<32x48xf32>, vector<48x64xf32>, vector<32x64xf32> -> vector<32x64xf32>
    %28 = arith.addf %22, %27 : vector<32x64xf32>
    %29 = vector.extract_strided_slice %9 {offsets = [1, 0, 0], sizes = [4, 8, 48], strides = [1, 1, 1]} : vector<5x8x48xf32> to vector<4x8x48xf32>
    %30 = vector.shape_cast %29 : vector<4x8x48xf32> to vector<32x48xf32>
    %c3 = arith.constant 3 : index
    %c0_33 = arith.constant 0 : index
    %c0_34 = arith.constant 0 : index
    %31 = vector.load %arg4[%c3, %c0_33, %c0_34] : memref<4x48x64xf32, #tpu.memory_space<vmem>>, vector<1x48x64xf32>
    %32 = vector.shape_cast %31 : vector<1x48x64xf32> to vector<48x64xf32>
    %cst_35 = arith.constant dense<0.000000e+00> : vector<32x64xf32>
    %33 = tpu.matmul %30, %32, %cst_35 {dimension_numbers = #tpu.dot_dimension_numbers<[1], [0], [0], [1], [0, 0, 1, 1], [], []>} : vector<32x48xf32>, vector<48x64xf32>, vector<32x64xf32> -> vector<32x64xf32>
    %34 = arith.addf %28, %33 : vector<32x64xf32>
    %c0_36 = arith.constant 0 : index
    %c0_37 = arith.constant 0 : index
    %35 = vector.load %arg5[%c0_36, %c0_37] : memref<1x64xf32, #tpu.memory_space<vmem>>, vector<1x64xf32>
    %36 = vector.broadcast %35 : vector<1x64xf32> to vector<32x64xf32>
    %37 = arith.addf %34, %36 : vector<32x64xf32>
    %cst_38 = arith.constant 0.000000e+00 : f32
    %38 = vector.broadcast %cst_38 : f32 to vector<32x64xf32>
    %39 = arith.maximumf %37, %38 : vector<32x64xf32>
    %40 = vector.shape_cast %39 : vector<32x64xf32> to vector<4x8x64xf32>
    %c0_39 = arith.constant 0 : index
    %c0_40 = arith.constant 0 : index
    %c0_41 = arith.constant 0 : index
    %c0_42 = arith.constant 0 : index
    %41 = vector.load %arg6[%c0_39, %c0_40, %c0_41, %c0_42] : memref<1x4x8x64xf32, #tpu.memory_space<vmem>>, vector<1x4x8x64xf32>
    %42 = vector.shape_cast %41 : vector<1x4x8x64xf32> to vector<4x8x64xf32>
    %43 = vector.shape_cast %40 : vector<4x8x64xf32> to vector<1x4x8x64xf32>
    tpu.vector_store %arg6[%c0_39, %c0_40, %c0_41, %c0_42], %43 {strides = array<i32>} : memref<1x4x8x64xf32, #tpu.memory_space<vmem>>, vector<1x4x8x64xf32>,
    return
  }
  func.func @transform_0(%arg0: i32, %arg1: i32) -> (i32, i32, i32, i32) {
    %c0_i32 = arith.constant 0 : i32
    %c0_i32_0 = arith.constant 0 : i32
    %c0_i32_1 = arith.constant 0 : i32
    return %arg0, %arg1, %c0_i32, %c0_i32_0 : i32, i32, i32, i32
  }
  func.func @transform_1(%arg0: i32, %arg1: i32) -> (i32, i32, i32, i32) {
    %c0_i32 = arith.constant 0 : i32
    %c0_i32_0 = arith.constant 0 : i32
    %c0_i32_1 = arith.constant 0 : i32
    return %arg0, %arg1, %c0_i32, %c0_i32_0 : i32, i32, i32, i32
  }
  func.func @transform_2(%arg0: i32, %arg1: i32) -> (i32, i32, i32) {
    %c0_i32 = arith.constant 0 : i32
    %c0_i32_0 = arith.constant 0 : i32
    %c0_i32_1 = arith.constant 0 : i32
    %c0_i32_2 = arith.constant 0 : i32
    return %c0_i32, %c0_i32_0, %c0_i32_1 : i32, i32, i32
  }
  func.func @transform_3(%arg0: i32, %arg1: i32) -> (i32, i32) {
    %c0_i32 = arith.constant 0 : i32
    %c0_i32_0 = arith.constant 0 : i32
    %c0_i32_1 = arith.constant 0 : i32
    return %c0_i32, %c0_i32_0 : i32, i32
  }
  func.func @transform_4(%arg0: i32, %arg1: i32) -> (i32, i32, i32, i32) {
    %c0_i32 = arith.constant 0 : i32
    %c0_i32_0 = arith.constant 0 : i32
    %c0_i32_1 = arith.constant 0 : i32
    return %arg0, %arg1, %c0_i32, %c0_i32_0 : i32, i32, i32, i32
  }
}

module attributes {stable_mosaic.version = 11 : i64} {
  func.func @_up_fused_kernel(%arg0: i32, %arg1: memref<64x64xf32, #tpu.memory_space<vmem>>, %arg2: memref<64x128xf32, #tpu.memory_space<vmem>>, %arg3: memref<64x128xf32, #tpu.memory_space<vmem>>, %arg4: memref<1x128xf32, #tpu.memory_space<vmem>>, %arg5: memref<128x128xf32, #tpu.memory_space<vmem>>, %arg6: memref<1x128xf32, #tpu.memory_space<vmem>>, %arg7: memref<64x128xf32, #tpu.memory_space<vmem>>) attributes {dimension_semantics = [#tpu.dimension_semantics<parallel>], iteration_bounds = array<i64: 1>, scalar_prefetch = 0 : i64, scratch_operands = 0 : i64, tpu.core_type = #tpu.core_type<tc>, window_params = [{transform_indices = @transform_0, window_bounds = array<i64: 64, 64>}, {transform_indices = @transform_1, window_bounds = array<i64: 64, 128>}, {pipeline_mode = #tpu.pipeline_mode<synchronous>, transform_indices = @transform_2, window_bounds = array<i64: 64, 128>}, {pipeline_mode = #tpu.pipeline_mode<synchronous>, transform_indices = @transform_3, window_bounds = array<i64: 1, 128>}, {pipeline_mode = #tpu.pipeline_mode<synchronous>, transform_indices = @transform_4, window_bounds = array<i64: 128, 128>}, {pipeline_mode = #tpu.pipeline_mode<synchronous>, transform_indices = @transform_5, window_bounds = array<i64: 1, 128>}, {transform_indices = @transform_6, window_bounds = array<i64: 64, 128>}]} {
    %c0 = arith.constant 0 : index
    %c0_0 = arith.constant 0 : index
    %0 = vector.load %arg1[%c0, %c0_0] : memref<64x64xf32, #tpu.memory_space<vmem>>, vector<64x64xf32>
    %c0_1 = arith.constant 0 : index
    %c0_2 = arith.constant 0 : index
    %1 = vector.load %arg3[%c0_1, %c0_2] : memref<64x128xf32, #tpu.memory_space<vmem>>, vector<64x128xf32>
    %cst = arith.constant dense<0.000000e+00> : vector<64x128xf32>
    %2 = tpu.matmul %0, %1, %cst {dimension_numbers = #tpu.dot_dimension_numbers<[1], [0], [0], [1], [0, 0, 1, 1], [], []>} : vector<64x64xf32>, vector<64x128xf32>, vector<64x128xf32> -> vector<64x128xf32>
    %c0_3 = arith.constant 0 : index
    %c0_4 = arith.constant 0 : index
    %3 = vector.load %arg4[%c0_3, %c0_4] : memref<1x128xf32, #tpu.memory_space<vmem>>, vector<1x128xf32>
    %4 = vector.broadcast %3 : vector<1x128xf32> to vector<64x128xf32>
    %5 = arith.addf %2, %4 : vector<64x128xf32>
    %c0_5 = arith.constant 0 : index
    %c0_6 = arith.constant 0 : index
    %6 = vector.load %arg2[%c0_5, %c0_6] : memref<64x128xf32, #tpu.memory_space<vmem>>, vector<64x128xf32>
    %7 = arith.addf %5, %6 : vector<64x128xf32>
    %cst_7 = arith.constant 0.000000e+00 : f32
    %8 = vector.broadcast %cst_7 : f32 to vector<64x128xf32>
    %9 = arith.maximumf %7, %8 : vector<64x128xf32>
    %c0_8 = arith.constant 0 : index
    %c0_9 = arith.constant 0 : index
    %10 = vector.load %arg5[%c0_8, %c0_9] : memref<128x128xf32, #tpu.memory_space<vmem>>, vector<128x128xf32>
    %cst_10 = arith.constant dense<0.000000e+00> : vector<64x128xf32>
    %11 = tpu.matmul %9, %10, %cst_10 {dimension_numbers = #tpu.dot_dimension_numbers<[1], [0], [0], [1], [0, 0, 1, 1], [], []>} : vector<64x128xf32>, vector<128x128xf32>, vector<64x128xf32> -> vector<64x128xf32>
    %c0_11 = arith.constant 0 : index
    %c0_12 = arith.constant 0 : index
    %12 = vector.load %arg6[%c0_11, %c0_12] : memref<1x128xf32, #tpu.memory_space<vmem>>, vector<1x128xf32>
    %13 = vector.broadcast %12 : vector<1x128xf32> to vector<64x128xf32>
    %14 = arith.addf %11, %13 : vector<64x128xf32>
    %c0_13 = arith.constant 0 : index
    %c0_14 = arith.constant 0 : index
    %15 = vector.load %arg7[%c0_13, %c0_14] : memref<64x128xf32, #tpu.memory_space<vmem>>, vector<64x128xf32>
    tpu.vector_store %arg7[%c0_13, %c0_14], %14 {strides = array<i32>} : memref<64x128xf32, #tpu.memory_space<vmem>>, vector<64x128xf32>,
    return
  }
  func.func @transform_0(%arg0: i32) -> (i32, i32) {
    %c0_i32 = arith.constant 0 : i32
    %c0_i32_0 = arith.constant 0 : i32
    return %arg0, %c0_i32 : i32, i32
  }
  func.func @transform_1(%arg0: i32) -> (i32, i32) {
    %c0_i32 = arith.constant 0 : i32
    %c0_i32_0 = arith.constant 0 : i32
    return %arg0, %c0_i32 : i32, i32
  }
  func.func @transform_2(%arg0: i32) -> (i32, i32) {
    %c0_i32 = arith.constant 0 : i32
    %c0_i32_0 = arith.constant 0 : i32
    %c0_i32_1 = arith.constant 0 : i32
    return %c0_i32, %c0_i32_0 : i32, i32
  }
  func.func @transform_3(%arg0: i32) -> (i32, i32) {
    %c0_i32 = arith.constant 0 : i32
    %c0_i32_0 = arith.constant 0 : i32
    %c0_i32_1 = arith.constant 0 : i32
    return %c0_i32, %c0_i32_0 : i32, i32
  }
  func.func @transform_4(%arg0: i32) -> (i32, i32) {
    %c0_i32 = arith.constant 0 : i32
    %c0_i32_0 = arith.constant 0 : i32
    %c0_i32_1 = arith.constant 0 : i32
    return %c0_i32, %c0_i32_0 : i32, i32
  }
  func.func @transform_5(%arg0: i32) -> (i32, i32) {
    %c0_i32 = arith.constant 0 : i32
    %c0_i32_0 = arith.constant 0 : i32
    %c0_i32_1 = arith.constant 0 : i32
    return %c0_i32, %c0_i32_0 : i32, i32
  }
  func.func @transform_6(%arg0: i32) -> (i32, i32) {
    %c0_i32 = arith.constant 0 : i32
    %c0_i32_0 = arith.constant 0 : i32
    return %arg0, %c0_i32 : i32, i32
  }
}

</mosaic_0001>

<bundles_post_ra>
// kernel: _lambda_.5
= control target key start
LH: loop header
LB: loop body
LE: loop exit
PB: predicated region body
PF: predicated region fallthrough
CT: control target
= control target key end

     0   :  { %vm46_vm0 = vcmask 523264   ;;  %s655_s2 = inlined_call_operand.vmem [shape: f32[64,128], index: 2, kind: input, shape index: {}]   ;;  %s656_s0 = inlined_call_operand.vmem [shape: f32[64,64], index: 0, kind: input, shape index: {}]   ;;  %s657_s4 = inlined_call_operand.vmem [shape: f32[128,128], index: 4, kind: input, shape index: {}]   ;;  %s658_s3 = inlined_call_operand.vmem [shape: f32[1,128], index: 3, kind: input, shape index: {}]   ;;  %s659_s1 = inlined_call_operand.vmem [shape: f32[64,128], index: 1, kind: input, shape index: {}]   ;;  %s660_s5 = inlined_call_operand.vmem [shape: f32[1,128], index: 5, kind: input, shape index: {}]   ;;  %s661_s6 = inlined_call_operand.vmem [shape: f32[64,128], index: 6, kind: output, shape index: {}]  }
   0x1   :  { %v38_v0 = vld [vmem:[%s655_s2 + $0x38] sm:$0xff]  ;;  %v37_v1 = vld [vmem:[%s655_s2 + $0x30] sm:$0xff]  ;;  %v36_v2 = vld [vmem:[%s655_s2 + $0x28] sm:$0xff] }
   0x2   :  { %390 = vmatprep.subr.mxu0 %v38_v0  ;;  %v23_v3 = vld [vmem:[%s656_s0] sm:$0xff]  ;;  %v215_v5 = vld [vmem:[%s657_s4 + $0x78] sm:$0xff]  ;;  %v214_v6 = vld [vmem:[%s657_s4 + $0x70] sm:$0xff] }
   0x3   :  { %391 = vmatpush3.msra.mxu0 %v38_v0  ;;  %406 = vmatprep.mubr.msk.f32.mxu0 %vm46_vm0, %v23_v3  ;;  %v35_v4 = vld [vmem:[%s655_s2 + $0x20] sm:$0xff]  ;;  %v34_v7 = vld [vmem:[%s655_s2 + $0x18] sm:$0xff]  ;;  %v213_v8 = vld [vmem:[%s657_s4 + $0x68] sm:$0xff] }
   0x4   :  { %392 = vmatprep.subr.mxu0 %v37_v1  ;;  %418 = vmatprep.subr.mxu1 %v215_v5  ;;  %v33_v9 = vld [vmem:[%s655_s2 + $0x10] sm:$0xff]  ;;  %v212_v10 = vld [vmem:[%s657_s4 + $0x60] sm:$0xff]  ;;  %v32_v11 = vld [vmem:[%s655_s2 + $0x8] sm:$0xff] }
   0x5   :  { %393 = vmatpush3.msra.mxu0 %v37_v1  ;;  %419 = vmatpush3.msra.mxu1 %v215_v5  ;;  %v211_v12 = vld [vmem:[%s657_s4 + $0x58] sm:$0xff]  ;;  %v31_v13 = vld [vmem:[%s655_s2] sm:$0xff]  ;;  %v210_v14 = vld [vmem:[%s657_s4 + $0x50] sm:$0xff] }
   0x6   :  { %394 = vmatprep.subr.mxu0 %v36_v2  ;;  %420 = vmatprep.subr.mxu1 %v214_v6  ;;  %v24_v15 = vld [vmem:[%s656_s0 + $0x8] sm:$0xff]  ;;  %v25_v16 = vld [vmem:[%s656_s0 + $0x10] sm:$0xff]  ;;  %v208_v18 = vld [vmem:[%s657_s4 + $0x40] sm:$0xff] }
   0x7   :  { %395 = vmatpush3.msra.mxu0 %v36_v2  ;;  %421 = vmatpush3.msra.mxu1 %v214_v6  ;;  %v209_v17 = vld [vmem:[%s657_s4 + $0x48] sm:$0xff]  ;;  %v26_v19 = vld [vmem:[%s656_s0 + $0x18] sm:$0xff]  ;;  %v27_v20 = vld [vmem:[%s656_s0 + $0x20] sm:$0xff] }
   0x8   :  { %396 = vmatprep.subr.mxu0 %v35_v4  ;;  %422 = vmatprep.subr.mxu1 %v213_v8  ;;  %v207_v21 = vld [vmem:[%s657_s4 + $0x38] sm:$0xff]  ;;  %v206_v22 = vld [vmem:[%s657_s4 + $0x30] sm:$0xff]  ;;  %v28_v23 = vld [vmem:[%s656_s0 + $0x28] sm:$0xff] }
   0x9   :  { %397 = vmatpush3.msra.mxu0 %v35_v4  ;;  %423 = vmatpush3.msra.mxu1 %v213_v8  ;;  %v29_v24 = vld [vmem:[%s656_s0 + $0x30] sm:$0xff]  ;;  %v205_v25 = vld [vmem:[%s657_s4 + $0x28] sm:$0xff]  ;;  %v30_v26 = vld [vmem:[%s656_s0 + $0x38] sm:$0xff] }
   0xa   :  { %398 = vmatprep.subr.mxu0 %v34_v7  ;;  %424 = vmatprep.subr.mxu1 %v212_v10  ;;  %v204_v27 = vld [vmem:[%s657_s4 + $0x20] sm:$0xff]  ;;  %v203_v28 = vld [vmem:[%s657_s4 + $0x18] sm:$0xff]  ;;  %v202_v29 = vld [vmem:[%s657_s4 + $0x10] sm:$0xff] }
   0xb   :  { %399 = vmatpush3.msra.mxu0 %v34_v7  ;;  %425 = vmatpush3.msra.mxu1 %v212_v10  ;;  %v201_v30 = vld [vmem:[%s657_s4 + $0x8] sm:$0xff]  ;;  %v200_v31 = vld [vmem:[%s657_s4] sm:$0xff]  ;;  %v179_v42 = vld [vmem:[%s659_s1 + $0x18] sm:$0xff] }
   0xc   :  { %400 = vmatprep.subr.mxu0 %v33_v9  ;;  %426 = vmatprep.subr.mxu1 %v211_v12  ;;  %v340_v32 = vld [vmem:[%s658_s3] ss:$0 sm:$0xff]  ;;  %v177_v35 = vld [vmem:[%s659_s1 + $0x8] sm:$0xff]  ;;  %v178_v45 = vld [vmem:[%s659_s1 + $0x10] sm:$0xff] }
   0xd   :  { %401 = vmatpush3.msra.mxu0 %v33_v9  ;;  %427 = vmatpush3.msra.mxu1 %v211_v12  ;;  %v176_v37 = vld [vmem:[%s659_s1] sm:$0xff]  ;;  %v181_v53 = vld [vmem:[%s659_s1 + $0x28] sm:$0xff]  ;;  %v183_v63 = vld [vmem:[%s659_s1 + $0x38] sm:$0xff] }
   0xe   :  { %402 = vmatprep.subr.mxu0 %v32_v11  ;;  %428 = vmatprep.subr.mxu1 %v210_v14  ;;  %v180_v55 = vld [vmem:[%s659_s1 + $0x20] sm:$0xff]  ;;  %v182_v1 = vld [vmem:[%s659_s1 + $0x30] sm:$0xff] }
   0xf   :  { %403 = vmatpush3.msra.mxu0 %v32_v11  ;;  %429 = vmatpush3.msra.mxu1 %v210_v14  ;;  %v349_v9 = vld [vmem:[%s660_s5] ss:$0 sm:$0xff] }
  0x10   :  { %404 = vmatprep.subr.mxu0 %v31_v13  ;;  %430 = vmatprep.subr.mxu1 %v209_v17 }
  0x11   :  { %405 = vmatpush3.msra.mxu0 %v31_v13  ;;  %431 = vmatpush3.msra.mxu1 %v209_v17 }
  0x12   :  { %407 = vmatmul.mubr.msk.f32.vlgmr.msra.gmra.mxu0 %vm46_vm0, %v24_v15  ;;  %432 = vmatprep.subr.mxu1 %v208_v18 }
  0x13   :  { %409 = vmatprep.mubr.msk.f32.mxu0 %vm46_vm0, %v25_v16  ;;  %433 = vmatpush3.msra.mxu1 %v208_v18 }
  0x14   :  { %434 = vmatprep.subr.mxu1 %v207_v21 }
  0x15   :  { %435 = vmatpush3.msra.mxu1 %v207_v21 }
  0x16   :  { %410 = vmatmul.mubr.msk.f32.gmra.mxu0 %vm46_vm0, %v26_v19  ;;  %436 = vmatprep.subr.mxu1 %v206_v22 }
  0x17   :  { %412 = vmatprep.mubr.msk.f32.mxu0 %vm46_vm0, %v27_v20  ;;  %437 = vmatpush3.msra.mxu1 %v206_v22 }
  0x18   :  { %438 = vmatprep.subr.mxu1 %v205_v25 }
  0x19   :  { %439 = vmatpush3.msra.mxu1 %v205_v25 }
  0x1a   :  { %413 = vmatmul.mubr.msk.f32.gmra.mxu0 %vm46_vm0, %v28_v23  ;;  %440 = vmatprep.subr.mxu1 %v204_v27 }
  0x1b   :  { %415 = vmatprep.mubr.msk.f32.mxu0 %vm46_vm0, %v29_v24  ;;  %441 = vmatpush3.msra.mxu1 %v204_v27 }
  0x1c   :  { %442 = vmatprep.subr.mxu1 %v203_v28 }
  0x1d   :  { %443 = vmatpush3.msra.mxu1 %v203_v28 }
  0x1e   :  { %416 = vmatmul.mubr.msk.f32.gmra.mxu0 %vm46_vm0, %v30_v26  ;;  %444 = vmatprep.subr.mxu1 %v202_v29 }
  0x1f   :  { %445 = vmatpush3.msra.mxu1 %v202_v29 }
  0x20   :  { %446 = vmatprep.subr.mxu1 %v201_v30 }
  0x21   :  { %447 = vmatpush3.msra.mxu1 %v201_v30 }
  0x22   :  { %448 = vmatprep.subr.mxu1 %v200_v31 }
  0x23   :  { %449 = vmatpush3.msra.mxu1 %v200_v31 }
  0xd2   :  { %v408_v33 = vpop.f32.mrf.mxu0 }
  0xd3   :  { %v143_v34 = vadd.f32 %v408_v33, %v340_v32 }
  0xd4   :  { %v137_v36 = vpop.f32.mrf.mxu0 }
  0xd5   :  { %v138_v38 = vadd.f32 %v340_v32, %v137_v36  ;;  %v185_v39 = vadd.f32 %v177_v35, %v143_v34 }
  0xd6   :  { %v411_v40 = vpop.f32.mrf.mxu0 }
  0xd7   :  { %v153_v41 = vadd.f32 %v411_v40, %v340_v32  ;;  %v184_v43 = vadd.f32 %v176_v37, %v138_v38  ;;  %v193_v48 = vmax.f32 %v185_v39, 0.0 }
  0xd8   :  { %v147_v44 = vpop.f32.mrf.mxu0 }
  0xd9   :  { %v148_v46 = vadd.f32 %v340_v32, %v147_v44  ;;  %v192_v47 = vmax.f32 %v184_v43, 0.0  ;;  %v187_v49 = vadd.f32 %v179_v42, %v153_v41 }
  0xda   :  { %v414_v50 = vpop.f32.mrf.mxu0 }
  0xdb   :  { %v186_v51 = vadd.f32 %v178_v45, %v148_v46  ;;  %v163_v52 = vadd.f32 %v414_v50, %v340_v32  ;;  %450 = vmatprep.mubr.f32.mxu1 %v192_v47  ;;  %v195_v58 = vmax.f32 %v187_v49, 0.0 }
  0xdc   :  { %v157_v54 = vpop.f32.mrf.mxu0  ;;  %451 = vmatmul.mubr.f32.vlgmr.msra.gmra.mxu1 %v193_v48 }
  0xdd   :  { %v194_v56 = vmax.f32 %v186_v51, 0.0  ;;  %v158_v57 = vadd.f32 %v340_v32, %v157_v54  ;;  %v189_v59 = vadd.f32 %v181_v53, %v163_v52 }
  0xde   :  { %v417_v60 = vpop.f32.mrf.mxu0 }
  0xdf   :  { %v188_v61 = vadd.f32 %v180_v55, %v158_v57  ;;  %v173_v62 = vadd.f32 %v417_v60, %v340_v32  ;;  %453 = vmatprep.mubr.f32.mxu1 %v194_v56  ;;  %v197_v4 = vmax.f32 %v189_v59, 0.0 }
  0xe0   :  { %v167_v0 = vpop.f32.mrf.mxu0  ;;  %454 = vmatmul.mubr.f32.gmra.mxu1 %v195_v58 }
  0xe1   :  { %v196_v2 = vmax.f32 %v188_v61, 0.0  ;;  %v168_v3 = vadd.f32 %v340_v32, %v167_v0  ;;  %v191_v5 = vadd.f32 %v183_v63, %v173_v62 }
  0xe3   :  { %v190_v6 = vadd.f32 %v182_v1, %v168_v3  ;;  %456 = vmatprep.mubr.f32.mxu1 %v196_v2  ;;  %v199_v8 = vmax.f32 %v191_v5, 0.0 }
  0xe4   :  { %457 = vmatmul.mubr.f32.gmra.mxu1 %v197_v4 }
  0xe5   :  { %v198_v7 = vmax.f32 %v190_v6, 0.0 }
  0xe7   :  { %459 = vmatprep.mubr.f32.mxu1 %v198_v7 }
  0xe8   :  { %460 = vmatmul.mubr.f32.gmra.mxu1 %v199_v8 }
 0x19c   :  { %v452_v10 = vpop.f32.mrf.mxu1 }
 0x19d   :  { %v295_v11 = vadd.f32 %v452_v10, %v349_v9 }
 0x19e   :  { %v289_v12 = vpop.f32.mrf.mxu1 }
 0x19f   :  { %329 = vst [vmem:[%s661_s6 + $0x8] sm:$0xff] %v295_v11  ;;  %v290_v13 = vadd.f32 %v349_v9, %v289_v12 }
 0x1a0   :  { %v455_v14 = vpop.f32.mrf.mxu1 }
 0x1a1   :  { %328 = vst [vmem:[%s661_s6] sm:$0xff] %v290_v13  ;;  %v305_v15 = vadd.f32 %v455_v14, %v349_v9 }
 0x1a2   :  { %v299_v16 = vpop.f32.mrf.mxu1 }
 0x1a3   :  { %331 = vst [vmem:[%s661_s6 + $0x18] sm:$0xff] %v305_v15  ;;  %v300_v17 = vadd.f32 %v349_v9, %v299_v16 }
 0x1a4   :  { %v458_v18 = vpop.f32.mrf.mxu1 }
 0x1a5   :  { %330 = vst [vmem:[%s661_s6 + $0x10] sm:$0xff] %v300_v17  ;;  %v315_v19 = vadd.f32 %v458_v18, %v349_v9 }
 0x1a6   :  { %v309_v20 = vpop.f32.mrf.mxu1 }
 0x1a7   :  { %333 = vst [vmem:[%s661_s6 + $0x28] sm:$0xff] %v315_v19  ;;  %v310_v21 = vadd.f32 %v349_v9, %v309_v20 }
 0x1a8   :  { %v461_v22 = vpop.f32.mrf.mxu1 }
 0x1a9   :  { %332 = vst [vmem:[%s661_s6 + $0x20] sm:$0xff] %v310_v21  ;;  %v325_v23 = vadd.f32 %v461_v22, %v349_v9 }
 0x1aa   :  { %v319_v24 = vpop.f32.mrf.mxu1 }
 0x1ab   :  { %335 = vst [vmem:[%s661_s6 + $0x38] sm:$0xff] %v325_v23  ;;  %v320_v25 = vadd.f32 %v349_v9, %v319_v24 }
 0x1ad   :  { %334 = vst [vmem:[%s661_s6 + $0x30] sm:$0xff] %v320_v25 }

// kernel: _lambda_.3
= control target key start
LH: loop header
LB: loop body
LE: loop exit
PB: predicated region body
PF: predicated region fallthrough
CT: control target
= control target key end

     0   :  { %s1098_s15 = smov 0   ;;  %s1100_s16 = smov 0   ;;  %s1280_s0 = inlined_call_operand.vmem [shape: f32[2,2,8,48], index: 0, kind: input, shape index: {}]   ;;  %s1281_s1 = inlined_call_operand.vmem [shape: f32[2,8,8,48], index: 1, kind: input, shape index: {}]   ;;  %s1282_s2 = inlined_call_operand.vmem [shape: f32[4,48,64], index: 2, kind: input, shape index: {}]   ;;  %s1283_s3 = inlined_call_operand.vmem [shape: f32[1,64], index: 3, kind: input, shape index: {}]   ;;  %s1284_s4 = inlined_call_operand.vmem [shape: f32[2,8,8,64], index: 4, kind: output, shape index: {}]  }
   0x1   :  { %s1102_s17 = smov 0   ;;  %s1104_s18 = smov 0  }
   0x2   :  { %s1106_s19 = smov 0  }
   0x3 LB: > { %s23_s20 = sadd.s32 1, %s1062_s17  ;;  %s26_s21 = sadd.s32 1, %s1066_s18  ;;  %s1070_s19 = sphi %s1106_s19, %s14_s19   ;;  %s1066_s18 = sphi %s1104_s18, %s1289_s18   ;;  %s1062_s17 = sphi %s1102_s17, %s1288_s17   ;;  %s1058_s16 = sphi %s1100_s16, %s1287_s16   ;;  %s1054_s15 = sphi %s1098_s15, %s1286_s15  }
   0x4   : > { %p24_p0 = scmp.ge.s32.totalorder %s23_s20, 2  ;;  %p833_p1 = scmp.ge.s32.totalorder %s1070_s19, 1 }
   0x5   : > { %p198_p2 = scmp.lt.s32.totalorder %s1070_s19, 5 }
   0x6   : > { %s1291_s20 = smov (%p24_p0, %s23_s20), 0  ;;  %s1293_s21 = smov (!%p24_p0, %s26_s21), %s1066_s18 }
   0x7   : > { %p199_p3 = pnand %p833_p1, %p198_p2  ;;  %p28_p4 = scmp.ge.s32.totalorder %s1293_s21, 2 }
   0x8   : > { %p240_p5 = scmp.lt.s32.totalorder (!%p199_p3), %s1058_s16, 1  ;;  %p242_p6 = scmp.lt.s32.totalorder (!%p199_p3), %s1054_s15, 1 }
   0x9   : > { %s1295_s21 = smov (%p28_p4, %s1293_s21), 0  ;;  %202 = sbr.rel (%p199_p3) target bundleno = 255 (0xff), region = 36 }
   0xa   : > { %s836_s30 = sshll.u32 (!%p199_p3), %s1054_s15, 2 }
   0xb   : > { %p1164_p7 = scmp.lt.s32.totalorder (!%p199_p3), %s836_s30, 7 }
   0xe   : > { %v847_v0 = vld [vmem:[%s1282_s2 + $0x58] sm:$0xff]  ;;  %v301_v1 = vld [vmem:[%s1282_s2 + $0x28] sm:$0xff]  ;;  %v846_v2 = vld [vmem:[%s1282_s2 + $0x50] sm:$0xff]  ;;  %vm268_vm0 = vcmask 385024   ;;  %s1297_s16 = smov (!%p240_p5, %s1058_s16), 1  ;;  %v1072_v6 = vmov 0.0  }
   0xf   : > { %919 = vmatprep.subr.mxu0 %v847_v0  ;;  %937 = vmatprep.subr.mxu1 %v301_v1  ;;  %v300_v3 = vld [vmem:[%s1282_s2 + $0x20] sm:$0xff]  ;;  %v845_v4 = vld [vmem:[%s1282_s2 + $0x48] sm:$0xff]  ;;  %v299_v5 = vld [vmem:[%s1282_s2 + $0x18] sm:$0xff]  ;;  %269 = vst.msk [vmem:[#allocation2] sm:$0x1] %vm268_vm0, %v1072_v6  ;;  %s243_s9 = scalar_select %p242_p6, %s1054_s15, 1 }
  0x10   : > { %920 = vmatpush3.msra.mxu0 %v847_v0  ;;  %938 = vmatpush3.msra.mxu1 %v301_v1  ;;  %270 = vst.msk [vmem:[#allocation2 + $0x10] sm:$0x1] %vm268_vm0, %v1072_v6  ;;  %271 = vst.msk [vmem:[#allocation2 + $0x20] sm:$0x1] %vm268_vm0, %v1072_v6  ;;  %v844_v7 = vld [vmem:[%s1282_s2 + $0x40] sm:$0xff]  ;;  %v298_v8 = vld [vmem:[%s1282_s2 + $0x10] sm:$0xff] }
  0x11   : > { %272 = vst.msk [vmem:[#allocation2 + $0x30] sm:$0x1] %vm268_vm0, %v1072_v6  ;;  %273 = vst.msk [vmem:[#allocation2 + $0x40] sm:$0x1] %vm268_vm0, %v1072_v6  ;;  %921 = vmatprep.subr.mxu0 %v846_v2  ;;  %939 = vmatprep.subr.mxu1 %v300_v3  ;;  %s834_s14 = sshll.u32 %s1297_s16, 1  ;;  %v843_v9 = vld [vmem:[%s1282_s2 + $0x38] sm:$0xff] }
  0x12   : > { %922 = vmatpush3.msra.mxu0 %v846_v2  ;;  %940 = vmatpush3.msra.mxu1 %v300_v3  ;;  %s245_s23 = sadd.s32 %s834_s14, %s243_s9  ;;  %v297_v10 = vld [vmem:[%s1282_s2 + $0x8] sm:$0xff]  ;;  %vm275_vm1 = vcmask 392192   ;;  %s837_s7 = sshll.u32 %s1297_s16, 3  ;;  %v842_v11 = vld [vmem:[%s1282_s2 + $0x30] sm:$0xff]  ;;  %v296_v12 = vld [vmem:[%s1282_s2] sm:$0xff]  ;;  %vm716_vm2 = vcmask 523264  }
  0x13   : > { %923 = vmatprep.subr.mxu0 %v845_v4  ;;  %941 = vmatprep.subr.mxu1 %v299_v5  ;;  %s835_s28 = sshll.u32 %s245_s23, 3  ;;  %s1299_s30 = smov (!%p1164_p7, %s836_s30), 7  ;;  %v861_v14 = vld [vmem:[%s1282_s2 + $0x88] sm:$0xff]  ;;  %v871_v15 = vld [vmem:[%s1282_s2 + $0xb8] sm:$0xff]  ;;  %v860_v22 = vld [vmem:[%s1282_s2 + $0x80] sm:$0xff] }
  0x14   : > { %924 = vmatpush3.msra.mxu0 %v845_v4  ;;  %942 = vmatpush3.msra.mxu1 %v299_v5  ;;  %s247_s6 = scalar_lea.vmem %s1280_s0, %s835_s28  ;;  %s1189_s16 = sadd.s32 %s837_s7, %s1299_s30  ;;  %v870_v25 = vld [vmem:[%s1282_s2 + $0xb0] sm:$0xff]  ;;  %v859_v26 = vld [vmem:[%s1282_s2 + $0x78] sm:$0xff]  ;;  %v869_v27 = vld [vmem:[%s1282_s2 + $0xa8] sm:$0xff] }
  0x15   : > { %925 = vmatprep.subr.mxu0 %v844_v7  ;;  %943 = vmatprep.subr.mxu1 %v298_v8  ;;  %v274_v13 = vld [vmem:[%s247_s6] sm:$0xff]  ;;  %s838_s15 = sshll.u32 %s1189_s16, 3  ;;  %v858_v32 = vld [vmem:[%s1282_s2 + $0x70] sm:$0xff]  ;;  %v857_v34 = vld [vmem:[%s1282_s2 + $0x68] sm:$0xff] }
  0x16   : > { %926 = vmatpush3.msra.mxu0 %v844_v7  ;;  %944 = vmatpush3.msra.mxu1 %v298_v8  ;;  %276 = vst.msk [vmem:[#allocation2 + $0x1] sm:$0xff] %vm275_vm1, %v274_v13  ;;  %s256_s30 = scalar_lea.vmem %s1281_s1, %s838_s15  ;;  %v868_v33 = vld [vmem:[%s1282_s2 + $0xa0] sm:$0xff]  ;;  %v867_v35 = vld [vmem:[%s1282_s2 + $0x98] sm:$0xff]  ;;  %v866_v37 = vld [vmem:[%s1282_s2 + $0x90] sm:$0xff]  ;;  %s266_s5 = scalar_lea.vmem %s1284_s4, %s838_s15 }
  0x17   : > { %927 = vmatprep.subr.mxu0 %v843_v9  ;;  %945 = vmatprep.subr.mxu1 %v297_v10  ;;  %v277_v16 = vld [vmem:[%s256_s30] sm:$0xff]  ;;  %v278_v17 = vld [vmem:[%s256_s30 + $0x8] sm:$0xff]  ;;  %v279_v18 = vld [vmem:[%s256_s30 + $0x10] sm:$0xff] }
  0x18   : > { %928 = vmatpush3.msra.mxu0 %v843_v9  ;;  %946 = vmatpush3.msra.mxu1 %v297_v10  ;;  %282 = vst.msk [vmem:[#allocation2 + $0x11] sm:$0xff] %vm275_vm1, %v277_v16  ;;  %283 = vst.msk [vmem:[#allocation2 + $0x21] sm:$0xff] %vm275_vm1, %v278_v17  ;;  %v280_v19 = vld [vmem:[%s256_s30 + $0x18] sm:$0xff]  ;;  %v856_v36 = vld [vmem:[%s1282_s2 + $0x60] sm:$0xff] }
  0x19   : > { %929 = vmatprep.subr.mxu0 %v842_v11  ;;  %947 = vmatprep.subr.mxu1 %v296_v12  ;;  %284 = vst.msk [vmem:[#allocation2 + $0x31] sm:$0xff] %vm275_vm1, %v279_v18  ;;  %285 = vst.msk [vmem:[#allocation2 + $0x41] sm:$0xff] %vm275_vm1, %v280_v19  ;;  %v876_v53 = vld [vmem:[%s1283_s3] ss:$0 sm:$0xff] }
  0x1a   : > { %930 = vmatpush3.msra.mxu0 %v842_v11  ;;  %948 = vmatpush3.msra.mxu1 %v296_v12 }
  0x1b   : > { %955 = vmatprep.subr.mxu0 %v861_v14  ;;  %973 = vmatprep.subr.mxu1 %v871_v15 }
  0x1d   : > { %v291_v20 = vld [vmem:[#allocation2 + $0x1] sm:$0xff] }
  0x1e   : > { %v286_v21 = vld [vmem:[#allocation2] sm:$0xff]  ;;  %931 = vmatprep.mubr.msk.f32.mxu0 %vm275_vm1, %v291_v20 }
  0x1f   : > { %949 = vmatprep.mubr.msk.f32.mxu1 %vm275_vm1, %v286_v21  ;;  %v292_v23 = vld [vmem:[#allocation2 + $0x11] sm:$0xff]  ;;  %v293_v28 = vld [vmem:[#allocation2 + $0x21] sm:$0xff] }
  0x20   : > { %v287_v24 = vld [vmem:[#allocation2 + $0x10] sm:$0xff]  ;;  %932 = vmatmul.mubr.msk.f32.vlgmr.msra.gmra.mxu0 %vm275_vm1, %v292_v23  ;;  %v288_v29 = vld [vmem:[#allocation2 + $0x20] sm:$0xff] }
  0x21   : > { %950 = vmatmul.mubr.msk.f32.vlgmr.msra.gmra.mxu1 %vm275_vm1, %v287_v24  ;;  %956 = vmatpush3.msra.mxu0 %v861_v14  ;;  %v294_v30 = vld [vmem:[#allocation2 + $0x31] sm:$0xff]  ;;  %v290_v38 = vld [vmem:[#allocation2 + $0x40] sm:$0xff] }
  0x22   : > { %974 = vmatpush3.msra.mxu1 %v871_v15  ;;  %957 = vmatprep.subr.mxu0 %v860_v22  ;;  %v289_v31 = vld [vmem:[#allocation2 + $0x30] sm:$0xff]  ;;  %v295_v39 = vld [vmem:[#allocation2 + $0x41] sm:$0xff] }
  0x23   : > { %975 = vmatprep.subr.mxu1 %v870_v25  ;;  %958 = vmatpush3.msra.mxu0 %v860_v22 }
  0x24   : > { %976 = vmatpush3.msra.mxu1 %v870_v25  ;;  %959 = vmatprep.subr.mxu0 %v859_v26 }
  0x25   : > { %977 = vmatprep.subr.mxu1 %v869_v27  ;;  %934 = vmatprep.mubr.msk.f32.mxu0 %vm275_vm1, %v293_v28 }
  0x26   : > { %952 = vmatprep.mubr.msk.f32.mxu1 %vm275_vm1, %v288_v29  ;;  %960 = vmatpush3.msra.mxu0 %v859_v26 }
  0x27   : > { %978 = vmatpush3.msra.mxu1 %v869_v27  ;;  %935 = vmatmul.mubr.msk.f32.gmra.mxu0 %vm275_vm1, %v294_v30 }
  0x28   : > { %953 = vmatmul.mubr.msk.f32.gmra.mxu1 %vm275_vm1, %v289_v31  ;;  %961 = vmatprep.subr.mxu0 %v858_v32 }
  0x29   : > { %979 = vmatprep.subr.mxu1 %v868_v33  ;;  %962 = vmatpush3.msra.mxu0 %v858_v32 }
  0x2a   : > { %980 = vmatpush3.msra.mxu1 %v868_v33  ;;  %963 = vmatprep.subr.mxu0 %v857_v34 }
  0x2b   : > { %981 = vmatprep.subr.mxu1 %v867_v35  ;;  %964 = vmatpush3.msra.mxu0 %v857_v34 }
  0x2c   : > { %982 = vmatpush3.msra.mxu1 %v867_v35  ;;  %965 = vmatprep.subr.mxu0 %v856_v36 }
  0x2d   : > { %983 = vmatprep.subr.mxu1 %v866_v37  ;;  %966 = vmatpush3.msra.mxu0 %v856_v36 }
  0x2e   : > { %967 = vmatprep.mubr.msk.f32.mxu0 %vm275_vm1, %v287_v24  ;;  %984 = vmatpush3.msra.mxu1 %v866_v37 }
  0x2f   : > { %985 = vmatprep.mubr.msk.f32.mxu1 %vm275_vm1, %v292_v23  ;;  %968 = vmatmul.mubr.msk.f32.vlgmr.msra.gmra.mxu0 %vm275_vm1, %v288_v29 }
  0x30   : > { %986 = vmatmul.mubr.msk.f32.vlgmr.msra.gmra.mxu1 %vm275_vm1, %v293_v28  ;;  %970 = vmatprep.mubr.msk.f32.mxu0 %vm275_vm1, %v289_v31 }
  0x31   : > { %988 = vmatprep.mubr.msk.f32.mxu1 %vm275_vm1, %v294_v30 }
  0x33   : > { %971 = vmatmul.mubr.msk.f32.gmra.mxu0 %vm275_vm1, %v290_v38 }
  0x34   : > { %989 = vmatmul.mubr.msk.f32.gmra.mxu1 %vm275_vm1, %v295_v39 }
  0xe0   : > { %v933_v40 = vpop.f32.mrf.mxu0 }
  0xe1   : > { %v951_v41 = vpop.f32.mrf.mxu1 }
  0xe2   : > { %v387_v42 = vpop.f32.mrf.mxu0  ;;  %v490_v48 = vadd.f32 %v951_v41, %v933_v40 }
  0xe3   : > { %v484_v43 = vpop.f32.mrf.mxu1 }
  0xe4   : > { %v485_v51 = vadd.f32 %v484_v43, %v387_v42 }
  0xe7   : > { %v936_v44 = vpop.f32.mrf.mxu0 }
  0xe8   : > { %v954_v45 = vpop.f32.mrf.mxu1 }
  0xe9   : > { %v397_v46 = vpop.f32.mrf.mxu0  ;;  %v500_v56 = vadd.f32 %v954_v45, %v936_v44 }
  0xea   : > { %v494_v47 = vpop.f32.mrf.mxu1 }
  0xeb   : > { %v495_v61 = vadd.f32 %v494_v47, %v397_v46 }
  0xef   : > { %v969_v49 = vpop.f32.mrf.mxu0 }
  0xf0   : > { %v987_v50 = vpop.f32.mrf.mxu1  ;;  %v599_v52 = vadd.f32 %v969_v49, %v490_v48 }
  0xf1   : > { %v579_v54 = vpop.f32.mrf.mxu0 }
  0xf2   : > { %v678_v55 = vpop.f32.mrf.mxu1  ;;  %v698_v57 = vadd.f32 %v987_v50, %v599_v52  ;;  %v598_v58 = vadd.f32 %v579_v54, %v485_v51 }
  0xf3   : > { %v972_v59 = vpop.f32.mrf.mxu0 }
  0xf4   : > { %v990_v60 = vpop.f32.mrf.mxu1  ;;  %v709_v62 = vadd.f32 %v876_v53, %v698_v57  ;;  %v697_v63 = vadd.f32 %v678_v55, %v598_v58  ;;  %v601_v0 = vadd.f32 %v972_v59, %v500_v56 }
  0xf5   : > { %v589_v1 = vpop.f32.mrf.mxu0 }
  0xf6   : > { %v713_v2 = vmax.f32 %v709_v62, 0.0  ;;  %v708_v3 = vadd.f32 %v876_v53, %v697_v63  ;;  %v700_v4 = vadd.f32 %v990_v60, %v601_v0  ;;  %v600_v5 = vadd.f32 %v589_v1, %v495_v61  ;;  %v688_v6 = vpop.f32.mrf.mxu1 }
  0xf8   : > { %718 = vst.msk [vmem:[%s266_s5 + $0x8] sm:$0xff] %vm716_vm2, %v713_v2  ;;  %v712_v7 = vmax.f32 %v708_v3, 0.0  ;;  %v711_v8 = vadd.f32 %v876_v53, %v700_v4  ;;  %v699_v9 = vadd.f32 %v688_v6, %v600_v5 }
  0xfa   : > { %717 = vst.msk [vmem:[%s266_s5] sm:$0xff] %vm716_vm2, %v712_v7  ;;  %v715_v10 = vmax.f32 %v711_v8, 0.0  ;;  %v710_v11 = vadd.f32 %v876_v53, %v699_v9 }
  0xfc   : > { %720 = vst.msk [vmem:[%s266_s5 + $0x18] sm:$0xff] %vm716_vm2, %v715_v10  ;;  %v714_v12 = vmax.f32 %v710_v11, 0.0 }
  0xfe   : > { %719 = vst.msk [vmem:[%s266_s5 + $0x10] sm:$0xff] %vm716_vm2, %v714_v12 }
  0xff PF: > { %s14_s19 = sadd.s32 1, %s1070_s19   ;;  %s1286_s15 = smov %s1062_s17 }
 0x100   : > { %p11_p8 = scmp.ge.s32.totalorder %s14_s19, 6   ;;  %s1287_s16 = smov %s1066_s18 }
 0x101   : > { %s1288_s17 = smov %s1291_s20  ;;  %s1289_s18 = smov %s1295_s21 }
 0x102   :  { %13 = sbr.rel (!%p11_p8) target bundleno = 3 (0x3), region = 73 }

// kernel: _lambda_.4
= control target key start
LH: loop header
LB: loop body
LE: loop exit
PB: predicated region body
PF: predicated region fallthrough
CT: control target
= control target key end

     0   :  { %s1136_s15 = smov 0   ;;  %s1138_s16 = smov 0   ;;  %s1342_s0 = inlined_call_operand.vmem [shape: f32[2,2,8,64], index: 0, kind: input, shape index: {}]   ;;  %s1343_s1 = inlined_call_operand.vmem [shape: f32[2,8,8,64], index: 1, kind: input, shape index: {}]   ;;  %s1344_s2 = inlined_call_operand.vmem [shape: f32[4,64,32], index: 2, kind: input, shape index: {}]   ;;  %s1345_s3 = inlined_call_operand.vmem [shape: f32[1,32], index: 3, kind: input, shape index: {}]   ;;  %s1346_s4 = inlined_call_operand.vmem [shape: f32[2,8,8,32], index: 4, kind: output, shape index: {}]  }
   0x1   :  { %s1140_s17 = smov 0   ;;  %s1142_s18 = smov 0  }
   0x2   :  { %s1144_s19 = smov 0  }
   0x3 LB: > { %s23_s20 = sadd.s32 1, %s1100_s17  ;;  %s26_s21 = sadd.s32 1, %s1104_s18  ;;  %s1108_s19 = sphi %s1144_s19, %s14_s19   ;;  %s1104_s18 = sphi %s1142_s18, %s1351_s18   ;;  %s1100_s17 = sphi %s1140_s17, %s1350_s17   ;;  %s1096_s16 = sphi %s1138_s16, %s1349_s16   ;;  %s1092_s15 = sphi %s1136_s15, %s1348_s15  }
   0x4   : > { %p24_p0 = scmp.ge.s32.totalorder %s23_s20, 2  ;;  %p841_p1 = scmp.ge.s32.totalorder %s1108_s19, 1 }
   0x5   : > { %p198_p2 = scmp.lt.s32.totalorder %s1108_s19, 5 }
   0x6   : > { %s1353_s20 = smov (%p24_p0, %s23_s20), 0  ;;  %s1355_s21 = smov (!%p24_p0, %s26_s21), %s1104_s18 }
   0x7   : > { %p199_p3 = pnand %p841_p1, %p198_p2  ;;  %p28_p4 = scmp.ge.s32.totalorder %s1355_s21, 2 }
   0x8   : > { %p240_p5 = scmp.lt.s32.totalorder (!%p199_p3), %s1096_s16, 1  ;;  %p242_p6 = scmp.lt.s32.totalorder (!%p199_p3), %s1092_s15, 1 }
   0x9   : > { %s1357_s21 = smov (%p28_p4, %s1355_s21), 0  ;;  %202 = sbr.rel (%p199_p3) target bundleno = 260 (0x104), region = 36 }
   0xa   : > { %s844_s30 = sshll.u32 (!%p199_p3), %s1092_s15, 2 }
   0xb   : > { %p1202_p7 = scmp.lt.s32.totalorder (!%p199_p3), %s844_s30, 7 }
   0xe   : > { %v857_v0 = vld [vmem:[%s1344_s2 + $0x78] sm:$0xff]  ;;  %v856_v2 = vld [vmem:[%s1344_s2 + $0x70] sm:$0xff]  ;;  %vm268_vm0 = vcmask 516096   ;;  %v855_v4 = vld [vmem:[%s1344_s2 + $0x68] sm:$0xff]  ;;  %s1359_s16 = smov (!%p240_p5, %s1096_s16), 1  ;;  %v1110_v6 = vmov 0.0  }
   0xf   : > { %v303_v1 = vld [vmem:[%s1344_s2 + $0x38] sm:$0xff]  ;;  %941 = vmatprep.subr.mxu0 %v857_v0  ;;  %v302_v3 = vld [vmem:[%s1344_s2 + $0x30] sm:$0xff]  ;;  %v301_v5 = vld [vmem:[%s1344_s2 + $0x28] sm:$0xff]  ;;  %269 = vst.msk [vmem:[#allocation2] sm:$0x1] %vm268_vm0, %v1110_v6  ;;  %s243_s9 = scalar_select %p242_p6, %s1092_s15, 1 }
  0x10   : > { %963 = vmatprep.subr.mxu1 %v303_v1  ;;  %942 = vmatpush3.msra.mxu0 %v857_v0  ;;  %270 = vst.msk [vmem:[#allocation2 + $0x10] sm:$0x1] %vm268_vm0, %v1110_v6  ;;  %271 = vst.msk [vmem:[#allocation2 + $0x20] sm:$0x1] %vm268_vm0, %v1110_v6  ;;  %v854_v7 = vld [vmem:[%s1344_s2 + $0x60] sm:$0xff]  ;;  %s842_s14 = sshll.u32 %s1359_s16, 1 }
  0x11   : > { %964 = vmatpush3.msra.mxu1 %v303_v1  ;;  %272 = vst.msk [vmem:[#allocation2 + $0x30] sm:$0x1] %vm268_vm0, %v1110_v6  ;;  %273 = vst.msk [vmem:[#allocation2 + $0x40] sm:$0x1] %vm268_vm0, %v1110_v6  ;;  %943 = vmatprep.subr.mxu0 %v856_v2  ;;  %v300_v8 = vld [vmem:[%s1344_s2 + $0x20] sm:$0xff]  ;;  %s245_s23 = sadd.s32 %s842_s14, %s243_s9  ;;  %v853_v9 = vld [vmem:[%s1344_s2 + $0x58] sm:$0xff] }
  0x12   : > { %965 = vmatprep.subr.mxu1 %v302_v3  ;;  %944 = vmatpush3.msra.mxu0 %v856_v2  ;;  %v299_v10 = vld [vmem:[%s1344_s2 + $0x18] sm:$0xff]  ;;  %s843_s28 = sshll.u32 %s245_s23, 3  ;;  %vm275_vm1 = vcmask 523264   ;;  %s845_s7 = sshll.u32 %s1359_s16, 3  ;;  %v852_v11 = vld [vmem:[%s1344_s2 + $0x50] sm:$0xff]  ;;  %v851_v14 = vld [vmem:[%s1344_s2 + $0x48] sm:$0xff] }
  0x13   : > { %966 = vmatpush3.msra.mxu1 %v302_v3  ;;  %945 = vmatprep.subr.mxu0 %v855_v4  ;;  %s247_s6 = scalar_lea.vmem %s1342_s0, %s843_s28  ;;  %v298_v12 = vld [vmem:[%s1344_s2 + $0x10] sm:$0xff]  ;;  %s1361_s30 = smov (!%p1202_p7, %s844_s30), 7  ;;  %v297_v15 = vld [vmem:[%s1344_s2 + $0x8] sm:$0xff]  ;;  %v850_v16 = vld [vmem:[%s1344_s2 + $0x40] sm:$0xff]  ;;  %vm724_vm2 = vcmask 261120  }
  0x14   : > { %967 = vmatprep.subr.mxu1 %v301_v5  ;;  %946 = vmatpush3.msra.mxu0 %v855_v4  ;;  %v274_v13 = vld [vmem:[%s247_s6] sm:$0xff]  ;;  %s1233_s23 = sadd.s32 %s845_s7, %s1361_s30  ;;  %v873_v22 = vld [vmem:[%s1344_s2 + $0xb8] sm:$0xff]  ;;  %v872_v26 = vld [vmem:[%s1344_s2 + $0xb0] sm:$0xff] }
  0x15   : > { %968 = vmatpush3.msra.mxu1 %v301_v5  ;;  %947 = vmatprep.subr.mxu0 %v854_v7  ;;  %276 = vst.msk [vmem:[#allocation2 + $0x1] sm:$0xff] %vm275_vm1, %v274_v13  ;;  %s846_s15 = sshll.u32 %s1233_s23, 3  ;;  %v296_v17 = vld [vmem:[%s1344_s2] sm:$0xff]  ;;  %v885_v23 = vld [vmem:[%s1344_s2 + $0xf8] sm:$0xff]  ;;  %v884_v29 = vld [vmem:[%s1344_s2 + $0xf0] sm:$0xff] }
  0x16   : > { %969 = vmatprep.subr.mxu1 %v300_v8  ;;  %948 = vmatpush3.msra.mxu0 %v854_v7  ;;  %s256_s30 = scalar_lea.vmem %s1343_s1, %s846_s15  ;;  %v871_v30 = vld [vmem:[%s1344_s2 + $0xa8] sm:$0xff]  ;;  %v870_v32 = vld [vmem:[%s1344_s2 + $0xa0] sm:$0xff]  ;;  %v869_v34 = vld [vmem:[%s1344_s2 + $0x98] sm:$0xff]  ;;  %s266_s28 = scalar_lea.vmem %s1346_s4, %s846_s15 }
  0x17   : > { %970 = vmatpush3.msra.mxu1 %v300_v8  ;;  %949 = vmatprep.subr.mxu0 %v853_v9  ;;  %v277_v18 = vld [vmem:[%s256_s30] sm:$0xff]  ;;  %v278_v19 = vld [vmem:[%s256_s30 + $0x8] sm:$0xff]  ;;  %v279_v20 = vld [vmem:[%s256_s30 + $0x10] sm:$0xff] }
  0x18   : > { %971 = vmatprep.subr.mxu1 %v299_v10  ;;  %950 = vmatpush3.msra.mxu0 %v853_v9  ;;  %282 = vst.msk [vmem:[#allocation2 + $0x11] sm:$0xff] %vm275_vm1, %v277_v18  ;;  %283 = vst.msk [vmem:[#allocation2 + $0x21] sm:$0xff] %vm275_vm1, %v278_v19  ;;  %v280_v21 = vld [vmem:[%s256_s30 + $0x18] sm:$0xff]  ;;  %v883_v31 = vld [vmem:[%s1344_s2 + $0xe8] sm:$0xff] }
  0x19   : > { %972 = vmatpush3.msra.mxu1 %v299_v10  ;;  %951 = vmatprep.subr.mxu0 %v852_v11  ;;  %284 = vst.msk [vmem:[#allocation2 + $0x31] sm:$0xff] %vm275_vm1, %v279_v20  ;;  %285 = vst.msk [vmem:[#allocation2 + $0x41] sm:$0xff] %vm275_vm1, %v280_v21  ;;  %v882_v33 = vld [vmem:[%s1344_s2 + $0xe0] sm:$0xff]  ;;  %v881_v35 = vld [vmem:[%s1344_s2 + $0xd8] sm:$0xff] }
  0x1a   : > { %973 = vmatprep.subr.mxu1 %v298_v12  ;;  %952 = vmatpush3.msra.mxu0 %v852_v11  ;;  %v868_v40 = vld [vmem:[%s1344_s2 + $0x90] sm:$0xff]  ;;  %v867_v42 = vld [vmem:[%s1344_s2 + $0x88] sm:$0xff]  ;;  %v866_v44 = vld [vmem:[%s1344_s2 + $0x80] sm:$0xff] }
  0x1b   : > { %974 = vmatpush3.msra.mxu1 %v298_v12  ;;  %953 = vmatprep.subr.mxu0 %v851_v14  ;;  %v880_v41 = vld [vmem:[%s1344_s2 + $0xd0] sm:$0xff]  ;;  %v879_v43 = vld [vmem:[%s1344_s2 + $0xc8] sm:$0xff]  ;;  %v878_v45 = vld [vmem:[%s1344_s2 + $0xc0] sm:$0xff] }
  0x1c   : > { %975 = vmatprep.subr.mxu1 %v297_v15  ;;  %954 = vmatpush3.msra.mxu0 %v851_v14  ;;  %v291_v24 = vld [vmem:[#allocation2 + $0x1] sm:$0xff]  ;;  %v890_v61 = vld [vmem:[%s1345_s3] ss:$0 sm:$0xff] }
  0x1d   : > { %976 = vmatpush3.msra.mxu1 %v297_v15  ;;  %955 = vmatprep.subr.mxu0 %v850_v16  ;;  %v286_v25 = vld [vmem:[#allocation2] sm:$0xff] }
  0x1e   : > { %977 = vmatprep.subr.mxu1 %v296_v17  ;;  %956 = vmatpush3.msra.mxu0 %v850_v16 }
  0x1f   : > { %978 = vmatpush3.msra.mxu1 %v296_v17  ;;  %957 = vmatprep.mubr.msk.f32.mxu0 %vm275_vm1, %v291_v24  ;;  %v292_v27 = vld [vmem:[#allocation2 + $0x11] sm:$0xff]  ;;  %v293_v36 = vld [vmem:[#allocation2 + $0x21] sm:$0xff] }
  0x20   : > { %979 = vmatprep.mubr.msk.f32.mxu1 %vm275_vm1, %v286_v25  ;;  %985 = vmatprep.subr.mxu0 %v873_v22  ;;  %v287_v28 = vld [vmem:[#allocation2 + $0x10] sm:$0xff]  ;;  %v288_v37 = vld [vmem:[#allocation2 + $0x20] sm:$0xff] }
  0x21   : > { %1007 = vmatprep.subr.mxu1 %v885_v23  ;;  %958 = vmatmul.mubr.msk.f32.vlgmr.msra.gmra.mxu0 %vm275_vm1, %v292_v27  ;;  %v294_v38 = vld [vmem:[#allocation2 + $0x31] sm:$0xff]  ;;  %v290_v46 = vld [vmem:[#allocation2 + $0x40] sm:$0xff] }
  0x22   : > { %980 = vmatmul.mubr.msk.f32.vlgmr.msra.gmra.mxu1 %vm275_vm1, %v287_v28  ;;  %986 = vmatpush3.msra.mxu0 %v873_v22  ;;  %v289_v39 = vld [vmem:[#allocation2 + $0x30] sm:$0xff]  ;;  %v295_v47 = vld [vmem:[#allocation2 + $0x41] sm:$0xff] }
  0x23   : > { %1008 = vmatpush3.msra.mxu1 %v885_v23  ;;  %987 = vmatprep.subr.mxu0 %v872_v26 }
  0x24   : > { %1009 = vmatprep.subr.mxu1 %v884_v29  ;;  %988 = vmatpush3.msra.mxu0 %v872_v26 }
  0x25   : > { %1010 = vmatpush3.msra.mxu1 %v884_v29  ;;  %989 = vmatprep.subr.mxu0 %v871_v30 }
  0x26   : > { %1011 = vmatprep.subr.mxu1 %v883_v31  ;;  %990 = vmatpush3.msra.mxu0 %v871_v30 }
  0x27   : > { %1012 = vmatpush3.msra.mxu1 %v883_v31  ;;  %991 = vmatprep.subr.mxu0 %v870_v32 }
  0x28   : > { %1013 = vmatprep.subr.mxu1 %v882_v33  ;;  %992 = vmatpush3.msra.mxu0 %v870_v32 }
  0x29   : > { %1014 = vmatpush3.msra.mxu1 %v882_v33  ;;  %993 = vmatprep.subr.mxu0 %v869_v34 }
  0x2a   : > { %1015 = vmatprep.subr.mxu1 %v881_v35  ;;  %960 = vmatprep.mubr.msk.f32.mxu0 %vm275_vm1, %v293_v36 }
  0x2b   : > { %982 = vmatprep.mubr.msk.f32.mxu1 %vm275_vm1, %v288_v37  ;;  %994 = vmatpush3.msra.mxu0 %v869_v34 }
  0x2c   : > { %1016 = vmatpush3.msra.mxu1 %v881_v35  ;;  %961 = vmatmul.mubr.msk.f32.gmra.mxu0 %vm275_vm1, %v294_v38 }
  0x2d   : > { %983 = vmatmul.mubr.msk.f32.gmra.mxu1 %vm275_vm1, %v289_v39  ;;  %995 = vmatprep.subr.mxu0 %v868_v40 }
  0x2e   : > { %1017 = vmatprep.subr.mxu1 %v880_v41  ;;  %996 = vmatpush3.msra.mxu0 %v868_v40 }
  0x2f   : > { %1018 = vmatpush3.msra.mxu1 %v880_v41  ;;  %997 = vmatprep.subr.mxu0 %v867_v42 }
  0x30   : > { %1019 = vmatprep.subr.mxu1 %v879_v43  ;;  %998 = vmatpush3.msra.mxu0 %v867_v42 }
  0x31   : > { %1020 = vmatpush3.msra.mxu1 %v879_v43  ;;  %999 = vmatprep.subr.mxu0 %v866_v44 }
  0x32   : > { %1021 = vmatprep.subr.mxu1 %v878_v45  ;;  %1000 = vmatpush3.msra.mxu0 %v866_v44 }
  0x33   : > { %1001 = vmatprep.mubr.msk.f32.mxu0 %vm275_vm1, %v287_v28  ;;  %1022 = vmatpush3.msra.mxu1 %v878_v45 }
  0x34   : > { %1023 = vmatprep.mubr.msk.f32.mxu1 %vm275_vm1, %v292_v27  ;;  %1002 = vmatmul.mubr.msk.f32.vlgmr.msra.gmra.mxu0 %vm275_vm1, %v288_v37 }
  0x35   : > { %1024 = vmatmul.mubr.msk.f32.vlgmr.msra.gmra.mxu1 %vm275_vm1, %v293_v36  ;;  %1004 = vmatprep.mubr.msk.f32.mxu0 %vm275_vm1, %v289_v39 }
  0x36   : > { %1026 = vmatprep.mubr.msk.f32.mxu1 %vm275_vm1, %v294_v38 }
  0x38   : > { %1005 = vmatmul.mubr.msk.f32.gmra.mxu0 %vm275_vm1, %v290_v46 }
  0x39   : > { %1027 = vmatmul.mubr.msk.f32.gmra.mxu1 %vm275_vm1, %v295_v47 }
  0xe1   : > { %v959_v48 = vpop.f32.mrf.mxu0 }
  0xe2   : > { %v981_v49 = vpop.f32.mrf.mxu1 }
  0xe3   : > { %v391_v50 = vpop.f32.mrf.mxu0  ;;  %v494_v56 = vadd.f32 %v981_v49, %v959_v48 }
  0xe4   : > { %v488_v51 = vpop.f32.mrf.mxu1 }
  0xe5   : > { %v489_v59 = vadd.f32 %v488_v51, %v391_v50 }
  0xec   : > { %v962_v52 = vpop.f32.mrf.mxu0 }
  0xed   : > { %v984_v53 = vpop.f32.mrf.mxu1 }
  0xee   : > { %v401_v54 = vpop.f32.mrf.mxu0  ;;  %v504_v0 = vadd.f32 %v984_v53, %v962_v52 }
  0xef   : > { %v498_v55 = vpop.f32.mrf.mxu1 }
  0xf0   : > { %v499_v5 = vadd.f32 %v498_v55, %v401_v54 }
  0xf4   : > { %v1003_v57 = vpop.f32.mrf.mxu0 }
  0xf5   : > { %v1025_v58 = vpop.f32.mrf.mxu1  ;;  %v605_v60 = vadd.f32 %v1003_v57, %v494_v56 }
  0xf6   : > { %v585_v62 = vpop.f32.mrf.mxu0 }
  0xf7   : > { %v686_v63 = vpop.f32.mrf.mxu1  ;;  %v706_v1 = vadd.f32 %v1025_v58, %v605_v60  ;;  %v604_v2 = vadd.f32 %v585_v62, %v489_v59 }
  0xf8   : > { %v1006_v3 = vpop.f32.mrf.mxu0 }
  0xf9   : > { %v1028_v4 = vpop.f32.mrf.mxu1  ;;  %v717_v6 = vadd.f32 %v890_v61, %v706_v1  ;;  %v705_v7 = vadd.f32 %v686_v63, %v604_v2  ;;  %v607_v8 = vadd.f32 %v1006_v3, %v504_v0 }
  0xfa   : > { %v595_v9 = vpop.f32.mrf.mxu0 }
  0xfb   : > { %v721_v10 = vmax.f32 %v717_v6, 0.0  ;;  %v716_v11 = vadd.f32 %v890_v61, %v705_v7  ;;  %v708_v12 = vadd.f32 %v1028_v4, %v607_v8  ;;  %v606_v13 = vadd.f32 %v595_v9, %v499_v5  ;;  %v696_v14 = vpop.f32.mrf.mxu1 }
  0xfd   : > { %726 = vst.msk [vmem:[%s266_s28 + $0x8] sm:$0xff] %vm724_vm2, %v721_v10  ;;  %v720_v15 = vmax.f32 %v716_v11, 0.0  ;;  %v719_v16 = vadd.f32 %v890_v61, %v708_v12  ;;  %v707_v17 = vadd.f32 %v696_v14, %v606_v13 }
  0xff   : > { %725 = vst.msk [vmem:[%s266_s28] sm:$0xff] %vm724_vm2, %v720_v15  ;;  %v723_v18 = vmax.f32 %v719_v16, 0.0  ;;  %v718_v19 = vadd.f32 %v890_v61, %v707_v17 }
 0x101   : > { %728 = vst.msk [vmem:[%s266_s28 + $0x18] sm:$0xff] %vm724_vm2, %v723_v18  ;;  %v722_v20 = vmax.f32 %v718_v19, 0.0 }
 0x103   : > { %727 = vst.msk [vmem:[%s266_s28 + $0x10] sm:$0xff] %vm724_vm2, %v722_v20 }
 0x104 PF: > { %s14_s19 = sadd.s32 1, %s1108_s19   ;;  %s1348_s15 = smov %s1100_s17 }
 0x105   : > { %p11_p8 = scmp.ge.s32.totalorder %s14_s19, 6   ;;  %s1349_s16 = smov %s1104_s18 }
 0x106   : > { %s1350_s17 = smov %s1353_s20  ;;  %s1351_s18 = smov %s1357_s21 }
 0x107   :  { %13 = sbr.rel (!%p11_p8) target bundleno = 3 (0x3), region = 73 }

</bundles_post_ra>
